<compile_context>
chip_gen: v6e
topology: v6e:2x2x1
jax: 0.10.0
libtpu: 0.0.40
codegen_flags: <defaults>
</compile_context>

<pallas_src>
import functools

import jax
import jax.numpy as jnp
from jax import lax
from jax.experimental import pallas as pl
from jax.experimental.pallas import tpu as pltpu


# ----------------------------------------------------------------------------
# Slab layouts (row offsets of each packed weight / bias)
# ----------------------------------------------------------------------------
def _ceil_to(n, m):
    return ((n + m - 1) // m) * m


def make_weight_layout(F, H, T):
    """bf16 weight slab: name -> (row_offset, rows, cols)."""
    H3 = 3 * H
    TF = T * F
    entries = [
        ("w0_h", H, H3),      # GRU layer-0 hidden weights, gates [r|z|n] in lanes
        ("w1_i", H, H3),      # GRU layer-1 input  weights
        ("w1_h", H, H3),      # GRU layer-1 hidden weights
        ("w_c1", H, 40),      # RNNModel.linear folded into head_c linear-1
        ("wd1A", TF, 32),     # head_d linear-1, pair-element-0 half
        ("wd1B", TF, 32),     # head_d linear-1, pair-element-1 half
        ("wc2_t", 40, F),     # head_c linear-2
        ("w_x0", F, H3),      # linear_em folded into GRU layer-0 input weights
    ]
    layout, off = {}, 0
    for name, rows, cols in entries:
        layout[name] = (off, rows, cols)
        off += _ceil_to(rows, 16)          # bf16 sublane tile = 16
    return layout, _ceil_to(off, 16), max(H3, 40)


def make_bias_layout(F, H):
    """f32 bias slab: name -> (row, cols). One row per bias vector."""
    H3 = 3 * H
    entries = [
        ("b_x0", H3), ("b1_i", H3), ("b0n_h", H), ("b1n_h", H),
        ("b_c1", 40), ("bc2", F), ("bd1", 32), ("gamma", 32),
        ("beta", 32), ("wd2", 32), ("bd2", 1),
    ]
    layout = {name: (i, cols) for i, (name, cols) in enumerate(entries)}
    return layout, len(entries), max(H3, 40)


def _load_w(w_ref, ent):
    off, rows, cols = ent
    return w_ref[off:off + rows, 0:cols]


def _load_b(b_ref, ent):
    row, cols = ent
    return b_ref[row:row + 1, 0:cols]


# ----------------------------------------------------------------------------
# Shared body: (folded linear_em ->) 2-layer GRU -> (folded RNN linear ->)
# projection_head_c.  Writes out_c_ref (B, T*F); returns final h0, h1.
# ----------------------------------------------------------------------------
def _gru_head_c(x_ref, w_ref, b_ref, gi0_scr, ys_scr, out_c_ref, cfg):
    B, T, F, H = cfg["B"], cfg["T"], cfg["F"], cfg["H"]
    H3 = 3 * H
    wl, bl = cfg["w_layout"], cfg["b_layout"]
    bf, f32 = jnp.bfloat16, jnp.float32

    # Hoisted, folded (linear_em + layer-0 input projection): one flat matmul
    # for all timesteps; result parked in VMEM scratch to bound live ranges.
    w_x0 = _load_w(w_ref, wl["w_x0"])                        # (F, 3H) bf16
    b_x0 = _load_b(b_ref, bl["b_x0"])                        # (1, 3H) f32
    gi0_scr[...] = (
        jnp.dot(x_ref[...].astype(bf), w_x0, preferred_element_type=f32) + b_x0)

    # Loop-invariant recurrence weights, loaded once.
    w0_h = _load_w(w_ref, wl["w0_h"])                        # (H, 3H)
    w1_i = _load_w(w_ref, wl["w1_i"])
    w1_h = _load_w(w_ref, wl["w1_h"])
    b0n_h = _load_b(b_ref, bl["b0n_h"])                      # (1, H)
    b1_i = _load_b(b_ref, bl["b1_i"])                        # (1, 3H)
    b1n_h = _load_b(b_ref, bl["b1n_h"])                      # (1, H)

    h0 = jnp.zeros((B, H), f32)      # begin_state -> zeros
    h1 = jnp.zeros((B, H), f32)
    # Static unroll over the (small, static) sequence length; only h0/h1 are
    # carried in vregs, per-step inputs/outputs live in scratch.
    for t in range(T):
        # ---- GRU layer 0: one concatenated hidden matmul, slice 96 lanes ----
        gi0 = gi0_scr[t * B:(t + 1) * B, :]                  # (B, 3H) f32
        gh0 = jnp.dot(h0.astype(bf), w0_h, preferred_element_type=f32)
        r = jax.nn.sigmoid(gi0[:, 0:H] + gh0[:, 0:H])
        z = jax.nn.sigmoid(gi0[:, H:2 * H] + gh0[:, H:2 * H])
        n = jnp.tanh(gi0[:, 2 * H:H3] + r * (gh0[:, 2 * H:H3] + b0n_h))
        h0 = (1.0 - z) * n + z * h0

        # ---- GRU layer 1: concatenated input + hidden matmuls ----
        gi1 = jnp.dot(h0.astype(bf), w1_i, preferred_element_type=f32) + b1_i
        gh1 = jnp.dot(h1.astype(bf), w1_h, preferred_element_type=f32)
        r = jax.nn.sigmoid(gi1[:, 0:H] + gh1[:, 0:H])
        z = jax.nn.sigmoid(gi1[:, H:2 * H] + gh1[:, H:2 * H])
        n = jnp.tanh(gi1[:, 2 * H:H3] + r * (gh1[:, 2 * H:H3] + b1n_h))
        h1 = (1.0 - z) * n + z * h1
        ys_scr[t * B:(t + 1) * B, :] = h1

    # Tail (RNNModel.linear folded into head_c linear-1), flat over all steps.
    y = ys_scr[...]                                          # (T*B, H) f32
    w_c1 = _load_w(w_ref, wl["w_c1"])                        # (H, 40)
    b_c1 = _load_b(b_ref, bl["b_c1"])
    hc = jnp.tanh(jnp.dot(y.astype(bf), w_c1, preferred_element_type=f32) + b_c1)
    wc2 = _load_w(w_ref, wl["wc2_t"])                        # (40, F)
    bc2 = _load_b(b_ref, bl["bc2"])
    oc = jnp.dot(hc.astype(bf), wc2, preferred_element_type=f32) + bc2  # (T*B,F)

    # Lane-dense (B, T*F) output layout (row t*B+b of oc -> columns t*F:(t+1)*F
    # of batch row b).  The wrapper's reshape to (B, T, F) is free.
    for t in range(T):
        out_c_ref[:, t * F:(t + 1) * F] = oc[t * B:(t + 1) * B, :]
    return h0, h1


# ----------------------------------------------------------------------------
# mode == "test": out_c (B, T*F) and final GRU state (2, B, H)
# ----------------------------------------------------------------------------
def mrscd_test_kernel(x_ref, w_ref, b_ref, out_c_ref, state_ref,
                      gi0_scr, ys_scr, *, cfg):
    h0, h1 = _gru_head_c(x_ref, w_ref, b_ref, gi0_scr, ys_scr, out_c_ref, cfg)
    state_ref[0] = h0
    state_ref[1] = h1


# ----------------------------------------------------------------------------
# mode == "train": out_c (B, T*F) and out_d (B//2, 1) with projection_head_d
# fused in-kernel (no HBM round trip, no selection matmuls).
# ----------------------------------------------------------------------------
def mrscd_train_kernel(x_ref, w_ref, b_ref, out_c_ref, out_d_ref,
                       gi0_scr, ys_scr, *, cfg):
    B = cfg["B"]
    wl, bl = cfg["w_layout"], cfg["b_layout"]
    bf, f32 = jnp.bfloat16, jnp.float32

    _gru_head_c(x_ref, w_ref, b_ref, gi0_scr, ys_scr, out_c_ref, cfg)

    # input_d[p] = concat(out_c[2p].flat, out_c[2p+1].flat); wd1 is pre-split
    # into its two within-pair halves so the concat is never materialized:
    # even/odd batch rows are read back from out_c via strided sublane loads.
    oc_even = out_c_ref[pl.ds(0, B // 2, stride=2), :].astype(bf)   # (B/2, T*F)
    oc_odd = out_c_ref[pl.ds(1, B // 2, stride=2), :].astype(bf)
    wd1A = _load_w(w_ref, wl["wd1A"])                               # (T*F, 32)
    wd1B = _load_w(w_ref, wl["wd1B"])
    bd1 = _load_b(b_ref, bl["bd1"])
    hh = (jnp.dot(oc_even, wd1A, preferred_element_type=f32)
          + jnp.dot(oc_odd, wd1B, preferred_element_type=f32) + bd1)

    # BatchNorm1d (training mode): biased batch statistics, eps = 1e-5.
    # TODO(synk): running_mean/running_var updates are not materialized.
    mean = jnp.mean(hh, axis=0, keepdims=True)
    var = jnp.mean((hh - mean) ** 2, axis=0, keepdims=True)
    gamma = _load_b(b_ref, bl["gamma"])
    beta = _load_b(b_ref, bl["beta"])
    th = jnp.tanh((hh - mean) * lax.rsqrt(var + 1e-5) * gamma + beta)

    # Linear(32, 1) as a lane reduction, then sigmoid.
    wd2 = _load_b(b_ref, bl["wd2"])
    bd2 = _load_b(b_ref, bl["bd2"])
    logit = jnp.sum(th * wd2, axis=-1, keepdims=True) + bd2
    out_d_ref[...] = jax.nn.sigmoid(logit)


# ----------------------------------------------------------------------------
# Parameters (PyTorch layouts) + wrapper-side folding / slab packing
# ----------------------------------------------------------------------------
def init_params(key, F, G, H, O, T):
    """Deterministic synthetic parameters in the PyTorch layer shapes."""
    def nxt():
        nonlocal key
        key, sub = jax.random.split(key)
        return sub

    def w(shape, scale=0.1):
        return scale * jax.random.normal(nxt(), shape, jnp.float32)

    p = {}
    p["w_em"] = w((G, F)); p["b_em"] = w((1, G))
    p["wih0"] = w((3 * H, G)); p["whh0"] = w((3 * H, H))
    p["bih0"] = w((1, 3 * H)); p["bhh0"] = w((1, 3 * H))
    p["wih1"] = w((3 * H, H)); p["whh1"] = w((3 * H, H))
    p["bih1"] = w((1, 3 * H)); p["bhh1"] = w((1, 3 * H))
    p["w_lin"] = w((O, H)); p["b_lin"] = w((1, O))
    p["wc1"] = w((40, O)); p["bc1"] = w((1, 40))
    p["wc2"] = w((F, 40)); p["bc2"] = w((1, F))
    p["wd1"] = w((32, 2 * T * F)); p["bd1"] = w((1, 32))
    p["gamma"] = jnp.ones((1, 32), jnp.float32)
    p["beta"] = jnp.zeros((1, 32), jnp.float32)
    p["wd2"] = w((1, 32)); p["bd2"] = w((1, 1))
    return p


def prepare_params(raw, T, F):
    """Fold + gate-concat in f32, then pack into one bf16 and one f32 slab."""
    H = raw["whh0"].shape[1]
    TF = T * F
    f32 = jnp.float32

    def fold_rz_bias(bih, bhh):   # fold hidden r/z biases into the input bias
        return bih + jnp.concatenate(
            [bhh[:, :H], bhh[:, H:2 * H], jnp.zeros((1, H), f32)], axis=1)

    w_ih0_t = raw["wih0"].T                                   # (G, 3H)
    weights = {
        "w_x0": raw["w_em"].T @ w_ih0_t,                      # (F, 3H)
        "w0_h": raw["whh0"].T,                                # (H, 3H)
        "w1_i": raw["wih1"].T,                                # (H, 3H)
        "w1_h": raw["whh1"].T,                                # (H, 3H)
        "w_c1": raw["w_lin"].T @ raw["wc1"].T,                # (H, 40)
        "wc2_t": raw["wc2"].T,                                # (40, F)
        "wd1A": raw["wd1"][:, :TF].T,                         # (T*F, 32)
        "wd1B": raw["wd1"][:, TF:2 * TF].T,                   # (T*F, 32)
    }
    biases = {
        "b_x0": raw["b_em"] @ w_ih0_t + fold_rz_bias(raw["bih0"], raw["bhh0"]),
        "b0n_h": raw["bhh0"][:, 2 * H:],
        "b1_i": fold_rz_bias(raw["bih1"], raw["bhh1"]),
        "b1n_h": raw["bhh1"][:, 2 * H:],
        "b_c1": raw["b_lin"] @ raw["wc1"].T + raw["bc1"],
        "bc2": raw["bc2"], "bd1": raw["bd1"], "gamma": raw["gamma"],
        "beta": raw["beta"], "wd2": raw["wd2"], "bd2": raw["bd2"],
    }

    w_layout, w_rows, w_width = make_weight_layout(F, H, T)
    b_layout, b_rows, b_width = make_bias_layout(F, H)
    w_slab = jnp.zeros((w_rows, w_width), jnp.bfloat16)
    for name, arr in weights.items():
        off, r, c = w_layout[name]
        w_slab = w_slab.at[off:off + r, 0:c].set(arr.astype(jnp.bfloat16))
    b_slab = jnp.zeros((b_rows, b_width), jnp.float32)
    for name, arr in biases.items():
        row, c = b_layout[name]
        b_slab = b_slab.at[row, 0:c].set(arr.reshape(-1))
    return w_slab, b_slab


# ----------------------------------------------------------------------------
# Wrapper
# ----------------------------------------------------------------------------
@functools.partial(jax.jit, static_argnames=("H", "mode"))
def mrscd_forward(x, w_slab, b_slab, *, H, mode="train"):
    B, T, F = x.shape
    w_layout, _, _ = make_weight_layout(F, H, T)
    b_layout, _, _ = make_bias_layout(F, H)
    cfg = dict(B=B, T=T, F=F, H=H, w_layout=w_layout, b_layout=b_layout)

    # Layout plumbing in the wrapper: time-major flattened input, lane-dense
    # (B, T*F) output (reshaped back for free).
    x_flat = jnp.transpose(x, (1, 0, 2)).reshape(T * B, F)

    vmem = pl.BlockSpec(memory_space=pltpu.MemorySpace.VMEM)
    scratch = [pltpu.VMEM((T * B, 3 * H), jnp.float32),   # hoisted layer-0 gates
               pltpu.VMEM((T * B, H), jnp.float32)]       # per-step GRU outputs
    # TODO(synk): for production batch sizes, add a ("parallel",) batch grid
    # (v7x has 2 TensorCores) and re-derive VMEM tiling (64 MiB on v7x).

    if mode == "test":
        out_c_flat, state = pl.pallas_call(
            functools.partial(mrscd_test_kernel, cfg=cfg),
            out_shape=(jax.ShapeDtypeStruct((B, T * F), jnp.float32),
                       jax.ShapeDtypeStruct((2, B, H), jnp.float32)),
            in_specs=[vmem, vmem, vmem],
            out_specs=(vmem, vmem),
            scratch_shapes=scratch,
        )(x_flat, w_slab, b_slab)
        return out_c_flat.reshape(B, T, F), state

    out_c_flat, out_d = pl.pallas_call(
        functools.partial(mrscd_train_kernel, cfg=cfg),
        out_shape=(jax.ShapeDtypeStruct((B, T * F), jnp.float32),
                   jax.ShapeDtypeStruct((B // 2, 1), jnp.float32)),
        in_specs=[vmem, vmem, vmem],
        out_specs=(vmem, vmem),
        scratch_shapes=scratch,
    )(x_flat, w_slab, b_slab)
    return out_c_flat.reshape(B, T, F), out_d


# ----------------------------------------------------------------------------
# Pure-JAX f32 reference of the PyTorch forward (GRU + head_c), for a loose
# numeric sanity check of the wrapper-side weight folding.
# ----------------------------------------------------------------------------
def mrscd_reference(x, raw):
    H = raw["whh0"].shape[1]

    def gru_layer(inp, wih, whh, bih, bhh):
        def step(h, xt):
            gi = xt @ wih.T + bih
            gh = h @ whh.T + bhh
            r = jax.nn.sigmoid(gi[:, :H] + gh[:, :H])
            z = jax.nn.sigmoid(gi[:, H:2 * H] + gh[:, H:2 * H])
            n = jnp.tanh(gi[:, 2 * H:] + r * gh[:, 2 * H:])
            h = (1.0 - z) * n + z * h
            return h, h
        h0 = jnp.zeros((inp.shape[1], H), jnp.float32)
        hT, ys = lax.scan(step, h0, inp)
        return ys, hT

    em = jnp.transpose(x @ raw["w_em"].T + raw["b_em"], (1, 0, 2))   # (T,B,G)
    y0, h0T = gru_layer(em, raw["wih0"], raw["whh0"], raw["bih0"], raw["bhh0"])
    y1, h1T = gru_layer(y0, raw["wih1"], raw["whh1"], raw["bih1"], raw["bhh1"])
    y_lin = y1 @ raw["w_lin"].T + raw["b_lin"]
    out_gru = jnp.transpose(y_lin, (1, 0, 2))                        # (B,T,O)
    hc = jnp.tanh(out_gru @ raw["wc1"].T + raw["bc1"])
    out_c = hc @ raw["wc2"].T + raw["bc2"]
    return out_c, jnp.stack([h0T, h1T], axis=0)


if __name__ == "__main__":
    # Shapes consistent with the module: input_fea_size F=4, input_gru_size
    # G=16, num_hiddens H=32, output_gru_size O=8, win_size_test T=8, batch B=4
    B, T, F = 4, 8, 4
    G, H, O = 16, 32, 8

    key = jax.random.PRNGKey(0)
    kx, kp = jax.random.split(key)
    x = jax.random.normal(kx, (B, T, F), jnp.float32)
    raw = init_params(kp, F, G, H, O, T)
    w_slab, b_slab = prepare_params(raw, T, F)

    # Training-mode forward (GRU + both projection heads + BN + sigmoid, fused).
    out_c, out_d = mrscd_forward(x, w_slab, b_slab, H=H, mode="train")
    # Test-mode forward (out_c + final GRU state, like `(out_c, _)`).
    out_c_t, state = mrscd_forward(x, w_slab, b_slab, H=H, mode="test")
    jax.block_until_ready((out_c, out_d, out_c_t, state))

    assert out_c.shape == (B, T, F)
    assert out_d.shape == (B // 2, 1)
    assert out_c_t.shape == (B, T, F)
    assert state.shape == (2, B, H)
    assert bool(jnp.all(jnp.isfinite(out_d)))

    # Loose tolerance: kernel uses bf16 MXU operands, reference is pure f32.
    ref_c, ref_state = mrscd_reference(x, raw)
    assert bool(jnp.max(jnp.abs(out_c - ref_c)) < 5e-2)
    assert bool(jnp.max(jnp.abs(out_c_t - ref_c)) < 5e-2)
    assert bool(jnp.max(jnp.abs(state - ref_state)) < 5e-2)

    print("KERNEL_OK")
</pallas_src>

<mosaic_0001>
module attributes {stable_mosaic.version = 11 : i64} {
  func.func @mrscd_train_kernel(%arg0: memref<32x4xf32, #tpu.memory_space<vmem>>, %arg1: memref<256x96xbf16, #tpu.memory_space<vmem>>, %arg2: memref<11x96xf32, #tpu.memory_space<vmem>>, %arg3: memref<4x32xf32, #tpu.memory_space<vmem>>, %arg4: memref<2x1xf32, #tpu.memory_space<vmem>>, %arg5: memref<32x96xf32, #tpu.memory_space<vmem>>, %arg6: memref<32x32xf32, #tpu.memory_space<vmem>>) attributes {dimension_semantics = [], scalar_prefetch = 0 : i64, scratch_operands = 2 : i64, tpu.core_type = #tpu.core_type<tc>} {
    %c240 = arith.constant 240 : index
    %c0 = arith.constant 0 : index
    %0 = vector.load %arg1[%c240, %c0] : memref<256x96xbf16, #tpu.memory_space<vmem>>, vector<4x96xbf16>
    %c0_0 = arith.constant 0 : index
    %c0_1 = arith.constant 0 : index
    %1 = vector.load %arg2[%c0_0, %c0_1] : memref<11x96xf32, #tpu.memory_space<vmem>>, vector<1x96xf32>
    %c0_2 = arith.constant 0 : index
    %c0_3 = arith.constant 0 : index
    %2 = vector.load %arg0[%c0_2, %c0_3] : memref<32x4xf32, #tpu.memory_space<vmem>>, vector<32x4xf32>
    %3 = arith.truncf %2 : vector<32x4xf32> to vector<32x4xbf16>
    %cst = arith.constant dense<0.000000e+00> : vector<32x96xf32>
    %4 = tpu.matmul %3, %0, %cst {dimension_numbers = #tpu.dot_dimension_numbers<[1], [0], [0], [1], [0, 0, 1, 1], [], []>} : vector<32x4xbf16>, vector<4x96xbf16>, vector<32x96xf32> -> vector<32x96xf32>
    %5 = vector.broadcast %1 : vector<1x96xf32> to vector<32x96xf32>
    %6 = arith.addf %4, %5 : vector<32x96xf32>
    %c0_4 = arith.constant 0 : index
    %c0_5 = arith.constant 0 : index
    %7 = vector.load %arg5[%c0_4, %c0_5] : memref<32x96xf32, #tpu.memory_space<vmem>>, vector<32x96xf32>
    tpu.vector_store %arg5[%c0_4, %c0_5], %6 {strides = array<i32>} : memref<32x96xf32, #tpu.memory_space<vmem>>, vector<32x96xf32>,
    %c0_6 = arith.constant 0 : index
    %c0_7 = arith.constant 0 : index
    %8 = vector.load %arg1[%c0_6, %c0_7] : memref<256x96xbf16, #tpu.memory_space<vmem>>, vector<32x96xbf16>
    %c32 = arith.constant 32 : index
    %c0_8 = arith.constant 0 : index
    %9 = vector.load %arg1[%c32, %c0_8] : memref<256x96xbf16, #tpu.memory_space<vmem>>, vector<32x96xbf16>
    %c64 = arith.constant 64 : index
    %c0_9 = arith.constant 0 : index
    %10 = vector.load %arg1[%c64, %c0_9] : memref<256x96xbf16, #tpu.memory_space<vmem>>, vector<32x96xbf16>
    %c2 = arith.constant 2 : index
    %c0_10 = arith.constant 0 : index
    %11 = vector.load %arg2[%c2, %c0_10] : memref<11x96xf32, #tpu.memory_space<vmem>>, vector<1x32xf32>
    %c1 = arith.constant 1 : index
    %c0_11 = arith.constant 0 : index
    %12 = vector.load %arg2[%c1, %c0_11] : memref<11x96xf32, #tpu.memory_space<vmem>>, vector<1x96xf32>
    %c3 = arith.constant 3 : index
    %c0_12 = arith.constant 0 : index
    %13 = vector.load %arg2[%c3, %c0_12] : memref<11x96xf32, #tpu.memory_space<vmem>>, vector<1x32xf32>
    %cst_13 = arith.constant 0.000000e+00 : f32
    %14 = vector.broadcast %cst_13 : f32 to vector<4x32xf32>
    %cst_14 = arith.constant 0.000000e+00 : f32
    %15 = vector.broadcast %cst_14 : f32 to vector<4x32xf32>
    %c0_15 = arith.constant 0 : index
    %c0_16 = arith.constant 0 : index
    %16 = vector.load %arg5[%c0_15, %c0_16] : memref<32x96xf32, #tpu.memory_space<vmem>>, vector<4x96xf32>
    %17 = arith.truncf %14 : vector<4x32xf32> to vector<4x32xbf16>
    %cst_17 = arith.constant dense<0.000000e+00> : vector<4x96xf32>
    %18 = tpu.matmul %17, %8, %cst_17 {dimension_numbers = #tpu.dot_dimension_numbers<[1], [0], [0], [1], [0, 0, 1, 1], [], []>} : vector<4x32xbf16>, vector<32x96xbf16>, vector<4x96xf32> -> vector<4x96xf32>
    %19 = vector.extract_strided_slice %16 {offsets = [0, 0], sizes = [4, 32], strides = [1, 1]} : vector<4x96xf32> to vector<4x32xf32>
    %20 = vector.extract_strided_slice %18 {offsets = [0, 0], sizes = [4, 32], strides = [1, 1]} : vector<4x96xf32> to vector<4x32xf32>
    %21 = arith.addf %19, %20 : vector<4x32xf32>
    %22 = arith.negf %21 : vector<4x32xf32>
    %23 = math.exp %22 : vector<4x32xf32>
    %cst_18 = arith.constant 1.000000e+00 : f32
    %24 = vector.broadcast %cst_18 : f32 to vector<4x32xf32>
    %25 = arith.addf %24, %23 : vector<4x32xf32>
    %26 = arith.divf %24, %25 : vector<4x32xf32>
    %27 = vector.extract_strided_slice %16 {offsets = [0, 32], sizes = [4, 32], strides = [1, 1]} : vector<4x96xf32> to vector<4x32xf32>
    %28 = vector.extract_strided_slice %18 {offsets = [0, 32], sizes = [4, 32], strides = [1, 1]} : vector<4x96xf32> to vector<4x32xf32>
    %29 = arith.addf %27, %28 : vector<4x32xf32>
    %30 = arith.negf %29 : vector<4x32xf32>
    %31 = math.exp %30 : vector<4x32xf32>
    %cst_19 = arith.constant 1.000000e+00 : f32
    %32 = vector.broadcast %cst_19 : f32 to vector<4x32xf32>
    %33 = arith.addf %32, %31 : vector<4x32xf32>
    %34 = arith.divf %32, %33 : vector<4x32xf32>
    %35 = vector.extract_strided_slice %16 {offsets = [0, 64], sizes = [4, 32], strides = [1, 1]} : vector<4x96xf32> to vector<4x32xf32>
    %36 = vector.extract_strided_slice %18 {offsets = [0, 64], sizes = [4, 32], strides = [1, 1]} : vector<4x96xf32> to vector<4x32xf32>
    %37 = vector.broadcast %11 : vector<1x32xf32> to vector<4x32xf32>
    %38 = arith.addf %36, %37 : vector<4x32xf32>
    %39 = arith.mulf %26, %38 : vector<4x32xf32>
    %40 = arith.addf %35, %39 : vector<4x32xf32>
    %41 = math.tanh %40 : vector<4x32xf32>
    %cst_20 = arith.constant 1.000000e+00 : f32
    %42 = vector.broadcast %cst_20 : f32 to vector<4x32xf32>
    %43 = arith.subf %42, %34 : vector<4x32xf32>
    %44 = arith.mulf %43, %41 : vector<4x32xf32>
    %45 = arith.mulf %34, %14 : vector<4x32xf32>
    %46 = arith.addf %44, %45 : vector<4x32xf32>
    %47 = arith.truncf %46 : vector<4x32xf32> to vector<4x32xbf16>
    %cst_21 = arith.constant dense<0.000000e+00> : vector<4x96xf32>
    %48 = tpu.matmul %47, %9, %cst_21 {dimension_numbers = #tpu.dot_dimension_numbers<[1], [0], [0], [1], [0, 0, 1, 1], [], []>} : vector<4x32xbf16>, vector<32x96xbf16>, vector<4x96xf32> -> vector<4x96xf32>
    %49 = vector.broadcast %12 : vector<1x96xf32> to vector<4x96xf32>
    %50 = arith.addf %48, %49 : vector<4x96xf32>
    %51 = arith.truncf %15 : vector<4x32xf32> to vector<4x32xbf16>
    %cst_22 = arith.constant dense<0.000000e+00> : vector<4x96xf32>
    %52 = tpu.matmul %51, %10, %cst_22 {dimension_numbers = #tpu.dot_dimension_numbers<[1], [0], [0], [1], [0, 0, 1, 1], [], []>} : vector<4x32xbf16>, vector<32x96xbf16>, vector<4x96xf32> -> vector<4x96xf32>
    %53 = vector.extract_strided_slice %50 {offsets = [0, 0], sizes = [4, 32], strides = [1, 1]} : vector<4x96xf32> to vector<4x32xf32>
    %54 = vector.extract_strided_slice %52 {offsets = [0, 0], sizes = [4, 32], strides = [1, 1]} : vector<4x96xf32> to vector<4x32xf32>
    %55 = arith.addf %53, %54 : vector<4x32xf32>
    %56 = arith.negf %55 : vector<4x32xf32>
    %57 = math.exp %56 : vector<4x32xf32>
    %cst_23 = arith.constant 1.000000e+00 : f32
    %58 = vector.broadcast %cst_23 : f32 to vector<4x32xf32>
    %59 = arith.addf %58, %57 : vector<4x32xf32>
    %60 = arith.divf %58, %59 : vector<4x32xf32>
    %61 = vector.extract_strided_slice %50 {offsets = [0, 32], sizes = [4, 32], strides = [1, 1]} : vector<4x96xf32> to vector<4x32xf32>
    %62 = vector.extract_strided_slice %52 {offsets = [0, 32], sizes = [4, 32], strides = [1, 1]} : vector<4x96xf32> to vector<4x32xf32>
    %63 = arith.addf %61, %62 : vector<4x32xf32>
    %64 = arith.negf %63 : vector<4x32xf32>
    %65 = math.exp %64 : vector<4x32xf32>
    %cst_24 = arith.constant 1.000000e+00 : f32
    %66 = vector.broadcast %cst_24 : f32 to vector<4x32xf32>
    %67 = arith.addf %66, %65 : vector<4x32xf32>
    %68 = arith.divf %66, %67 : vector<4x32xf32>
    %69 = vector.extract_strided_slice %50 {offsets = [0, 64], sizes = [4, 32], strides = [1, 1]} : vector<4x96xf32> to vector<4x32xf32>
    %70 = vector.extract_strided_slice %52 {offsets = [0, 64], sizes = [4, 32], strides = [1, 1]} : vector<4x96xf32> to vector<4x32xf32>
    %71 = vector.broadcast %13 : vector<1x32xf32> to vector<4x32xf32>
    %72 = arith.addf %70, %71 : vector<4x32xf32>
    %73 = arith.mulf %60, %72 : vector<4x32xf32>
    %74 = arith.addf %69, %73 : vector<4x32xf32>
    %75 = math.tanh %74 : vector<4x32xf32>
    %cst_25 = arith.constant 1.000000e+00 : f32
    %76 = vector.broadcast %cst_25 : f32 to vector<4x32xf32>
    %77 = arith.subf %76, %68 : vector<4x32xf32>
    %78 = arith.mulf %77, %75 : vector<4x32xf32>
    %79 = arith.mulf %68, %15 : vector<4x32xf32>
    %80 = arith.addf %78, %79 : vector<4x32xf32>
    %c0_26 = arith.constant 0 : index
    %c0_27 = arith.constant 0 : index
    %81 = vector.load %arg6[%c0_26, %c0_27] : memref<32x32xf32, #tpu.memory_space<vmem>>, vector<4x32xf32>
    tpu.vector_store %arg6[%c0_26, %c0_27], %80 {strides = array<i32>} : memref<32x32xf32, #tpu.memory_space<vmem>>, vector<4x32xf32>,
    %c4 = arith.constant 4 : index
    %c0_28 = arith.constant 0 : index
    %82 = vector.load %arg5[%c4, %c0_28] : memref<32x96xf32, #tpu.memory_space<vmem>>, vector<4x96xf32>
    %83 = arith.truncf %46 : vector<4x32xf32> to vector<4x32xbf16>
    %cst_29 = arith.constant dense<0.000000e+00> : vector<4x96xf32>
    %84 = tpu.matmul %83, %8, %cst_29 {dimension_numbers = #tpu.dot_dimension_numbers<[1], [0], [0], [1], [0, 0, 1, 1], [], []>} : vector<4x32xbf16>, vector<32x96xbf16>, vector<4x96xf32> -> vector<4x96xf32>
    %85 = vector.extract_strided_slice %82 {offsets = [0, 0], sizes = [4, 32], strides = [1, 1]} : vector<4x96xf32> to vector<4x32xf32>
    %86 = vector.extract_strided_slice %84 {offsets = [0, 0], sizes = [4, 32], strides = [1, 1]} : vector<4x96xf32> to vector<4x32xf32>
    %87 = arith.addf %85, %86 : vector<4x32xf32>
    %88 = arith.negf %87 : vector<4x32xf32>
    %89 = math.exp %88 : vector<4x32xf32>
    %cst_30 = arith.constant 1.000000e+00 : f32
    %90 = vector.broadcast %cst_30 : f32 to vector<4x32xf32>
    %91 = arith.addf %90, %89 : vector<4x32xf32>
    %92 = arith.divf %90, %91 : vector<4x32xf32>
    %93 = vector.extract_strided_slice %82 {offsets = [0, 32], sizes = [4, 32], strides = [1, 1]} : vector<4x96xf32> to vector<4x32xf32>
    %94 = vector.extract_strided_slice %84 {offsets = [0, 32], sizes = [4, 32], strides = [1, 1]} : vector<4x96xf32> to vector<4x32xf32>
    %95 = arith.addf %93, %94 : vector<4x32xf32>
    %96 = arith.negf %95 : vector<4x32xf32>
    %97 = math.exp %96 : vector<4x32xf32>
    %cst_31 = arith.constant 1.000000e+00 : f32
    %98 = vector.broadcast %cst_31 : f32 to vector<4x32xf32>
    %99 = arith.addf %98, %97 : vector<4x32xf32>
    %100 = arith.divf %98, %99 : vector<4x32xf32>
    %101 = vector.extract_strided_slice %82 {offsets = [0, 64], sizes = [4, 32], strides = [1, 1]} : vector<4x96xf32> to vector<4x32xf32>
    %102 = vector.extract_strided_slice %84 {offsets = [0, 64], sizes = [4, 32], strides = [1, 1]} : vector<4x96xf32> to vector<4x32xf32>
    %103 = vector.broadcast %11 : vector<1x32xf32> to vector<4x32xf32>
    %104 = arith.addf %102, %103 : vector<4x32xf32>
    %105 = arith.mulf %92, %104 : vector<4x32xf32>
    %106 = arith.addf %101, %105 : vector<4x32xf32>
    %107 = math.tanh %106 : vector<4x32xf32>
    %cst_32 = arith.constant 1.000000e+00 : f32
    %108 = vector.broadcast %cst_32 : f32 to vector<4x32xf32>
    %109 = arith.subf %108, %100 : vector<4x32xf32>
    %110 = arith.mulf %109, %107 : vector<4x32xf32>
    %111 = arith.mulf %100, %46 : vector<4x32xf32>
    %112 = arith.addf %110, %111 : vector<4x32xf32>
    %113 = arith.truncf %112 : vector<4x32xf32> to vector<4x32xbf16>
    %cst_33 = arith.constant dense<0.000000e+00> : vector<4x96xf32>
    %114 = tpu.matmul %113, %9, %cst_33 {dimension_numbers = #tpu.dot_dimension_numbers<[1], [0], [0], [1], [0, 0, 1, 1], [], []>} : vector<4x32xbf16>, vector<32x96xbf16>, vector<4x96xf32> -> vector<4x96xf32>
    %115 = vector.broadcast %12 : vector<1x96xf32> to vector<4x96xf32>
    %116 = arith.addf %114, %115 : vector<4x96xf32>
    %117 = arith.truncf %80 : vector<4x32xf32> to vector<4x32xbf16>
    %cst_34 = arith.constant dense<0.000000e+00> : vector<4x96xf32>
    %118 = tpu.matmul %117, %10, %cst_34 {dimension_numbers = #tpu.dot_dimension_numbers<[1], [0], [0], [1], [0, 0, 1, 1], [], []>} : vector<4x32xbf16>, vector<32x96xbf16>, vector<4x96xf32> -> vector<4x96xf32>
    %119 = vector.extract_strided_slice %116 {offsets = [0, 0], sizes = [4, 32], strides = [1, 1]} : vector<4x96xf32> to vector<4x32xf32>
    %120 = vector.extract_strided_slice %118 {offsets = [0, 0], sizes = [4, 32], strides = [1, 1]} : vector<4x96xf32> to vector<4x32xf32>
    %121 = arith.addf %119, %120 : vector<4x32xf32>
    %122 = arith.negf %121 : vector<4x32xf32>
    %123 = math.exp %122 : vector<4x32xf32>
    %cst_35 = arith.constant 1.000000e+00 : f32
    %124 = vector.broadcast %cst_35 : f32 to vector<4x32xf32>
    %125 = arith.addf %124, %123 : vector<4x32xf32>
    %126 = arith.divf %124, %125 : vector<4x32xf32>
    %127 = vector.extract_strided_slice %116 {offsets = [0, 32], sizes = [4, 32], strides = [1, 1]} : vector<4x96xf32> to vector<4x32xf32>
    %128 = vector.extract_strided_slice %118 {offsets = [0, 32], sizes = [4, 32], strides = [1, 1]} : vector<4x96xf32> to vector<4x32xf32>
    %129 = arith.addf %127, %128 : vector<4x32xf32>
    %130 = arith.negf %129 : vector<4x32xf32>
    %131 = math.exp %130 : vector<4x32xf32>
    %cst_36 = arith.constant 1.000000e+00 : f32
    %132 = vector.broadcast %cst_36 : f32 to vector<4x32xf32>
    %133 = arith.addf %132, %131 : vector<4x32xf32>
    %134 = arith.divf %132, %133 : vector<4x32xf32>
    %135 = vector.extract_strided_slice %116 {offsets = [0, 64], sizes = [4, 32], strides = [1, 1]} : vector<4x96xf32> to vector<4x32xf32>
    %136 = vector.extract_strided_slice %118 {offsets = [0, 64], sizes = [4, 32], strides = [1, 1]} : vector<4x96xf32> to vector<4x32xf32>
    %137 = vector.broadcast %13 : vector<1x32xf32> to vector<4x32xf32>
    %138 = arith.addf %136, %137 : vector<4x32xf32>
    %139 = arith.mulf %126, %138 : vector<4x32xf32>
    %140 = arith.addf %135, %139 : vector<4x32xf32>
    %141 = math.tanh %140 : vector<4x32xf32>
    %cst_37 = arith.constant 1.000000e+00 : f32
    %142 = vector.broadcast %cst_37 : f32 to vector<4x32xf32>
    %143 = arith.subf %142, %134 : vector<4x32xf32>
    %144 = arith.mulf %143, %141 : vector<4x32xf32>
    %145 = arith.mulf %134, %80 : vector<4x32xf32>
    %146 = arith.addf %144, %145 : vector<4x32xf32>
    %c4_38 = arith.constant 4 : index
    %c0_39 = arith.constant 0 : index
    %147 = vector.load %arg6[%c4_38, %c0_39] : memref<32x32xf32, #tpu.memory_space<vmem>>, vector<4x32xf32>
    tpu.vector_store %arg6[%c4_38, %c0_39], %146 {strides = array<i32>} : memref<32x32xf32, #tpu.memory_space<vmem>>, vector<4x32xf32>,
    %c8 = arith.constant 8 : index
    %c0_40 = arith.constant 0 : index
    %148 = vector.load %arg5[%c8, %c0_40] : memref<32x96xf32, #tpu.memory_space<vmem>>, vector<4x96xf32>
    %149 = arith.truncf %112 : vector<4x32xf32> to vector<4x32xbf16>
    %cst_41 = arith.constant dense<0.000000e+00> : vector<4x96xf32>
    %150 = tpu.matmul %149, %8, %cst_41 {dimension_numbers = #tpu.dot_dimension_numbers<[1], [0], [0], [1], [0, 0, 1, 1], [], []>} : vector<4x32xbf16>, vector<32x96xbf16>, vector<4x96xf32> -> vector<4x96xf32>
    %151 = vector.extract_strided_slice %148 {offsets = [0, 0], sizes = [4, 32], strides = [1, 1]} : vector<4x96xf32> to vector<4x32xf32>
    %152 = vector.extract_strided_slice %150 {offsets = [0, 0], sizes = [4, 32], strides = [1, 1]} : vector<4x96xf32> to vector<4x32xf32>
    %153 = arith.addf %151, %152 : vector<4x32xf32>
    %154 = arith.negf %153 : vector<4x32xf32>
    %155 = math.exp %154 : vector<4x32xf32>
    %cst_42 = arith.constant 1.000000e+00 : f32
    %156 = vector.broadcast %cst_42 : f32 to vector<4x32xf32>
    %157 = arith.addf %156, %155 : vector<4x32xf32>
    %158 = arith.divf %156, %157 : vector<4x32xf32>
    %159 = vector.extract_strided_slice %148 {offsets = [0, 32], sizes = [4, 32], strides = [1, 1]} : vector<4x96xf32> to vector<4x32xf32>
    %160 = vector.extract_strided_slice %150 {offsets = [0, 32], sizes = [4, 32], strides = [1, 1]} : vector<4x96xf32> to vector<4x32xf32>
    %161 = arith.addf %159, %160 : vector<4x32xf32>
    %162 = arith.negf %161 : vector<4x32xf32>
    %163 = math.exp %162 : vector<4x32xf32>
    %cst_43 = arith.constant 1.000000e+00 : f32
    %164 = vector.broadcast %cst_43 : f32 to vector<4x32xf32>
    %165 = arith.addf %164, %163 : vector<4x32xf32>
    %166 = arith.divf %164, %165 : vector<4x32xf32>
    %167 = vector.extract_strided_slice %148 {offsets = [0, 64], sizes = [4, 32], strides = [1, 1]} : vector<4x96xf32> to vector<4x32xf32>
    %168 = vector.extract_strided_slice %150 {offsets = [0, 64], sizes = [4, 32], strides = [1, 1]} : vector<4x96xf32> to vector<4x32xf32>
    %169 = vector.broadcast %11 : vector<1x32xf32> to vector<4x32xf32>
    %170 = arith.addf %168, %169 : vector<4x32xf32>
    %171 = arith.mulf %158, %170 : vector<4x32xf32>
    %172 = arith.addf %167, %171 : vector<4x32xf32>
    %173 = math.tanh %172 : vector<4x32xf32>
    %cst_44 = arith.constant 1.000000e+00 : f32
    %174 = vector.broadcast %cst_44 : f32 to vector<4x32xf32>
    %175 = arith.subf %174, %166 : vector<4x32xf32>
    %176 = arith.mulf %175, %173 : vector<4x32xf32>
    %177 = arith.mulf %166, %112 : vector<4x32xf32>
    %178 = arith.addf %176, %177 : vector<4x32xf32>
    %179 = arith.truncf %178 : vector<4x32xf32> to vector<4x32xbf16>
    %cst_45 = arith.constant dense<0.000000e+00> : vector<4x96xf32>
    %180 = tpu.matmul %179, %9, %cst_45 {dimension_numbers = #tpu.dot_dimension_numbers<[1], [0], [0], [1], [0, 0, 1, 1], [], []>} : vector<4x32xbf16>, vector<32x96xbf16>, vector<4x96xf32> -> vector<4x96xf32>
    %181 = vector.broadcast %12 : vector<1x96xf32> to vector<4x96xf32>
    %182 = arith.addf %180, %181 : vector<4x96xf32>
    %183 = arith.truncf %146 : vector<4x32xf32> to vector<4x32xbf16>
    %cst_46 = arith.constant dense<0.000000e+00> : vector<4x96xf32>
    %184 = tpu.matmul %183, %10, %cst_46 {dimension_numbers = #tpu.dot_dimension_numbers<[1], [0], [0], [1], [0, 0, 1, 1], [], []>} : vector<4x32xbf16>, vector<32x96xbf16>, vector<4x96xf32> -> vector<4x96xf32>
    %185 = vector.extract_strided_slice %182 {offsets = [0, 0], sizes = [4, 32], strides = [1, 1]} : vector<4x96xf32> to vector<4x32xf32>
    %186 = vector.extract_strided_slice %184 {offsets = [0, 0], sizes = [4, 32], strides = [1, 1]} : vector<4x96xf32> to vector<4x32xf32>
    %187 = arith.addf %185, %186 : vector<4x32xf32>
    %188 = arith.negf %187 : vector<4x32xf32>
    %189 = math.exp %188 : vector<4x32xf32>
    %cst_47 = arith.constant 1.000000e+00 : f32
    %190 = vector.broadcast %cst_47 : f32 to vector<4x32xf32>
    %191 = arith.addf %190, %189 : vector<4x32xf32>
    %192 = arith.divf %190, %191 : vector<4x32xf32>
    %193 = vector.extract_strided_slice %182 {offsets = [0, 32], sizes = [4, 32], strides = [1, 1]} : vector<4x96xf32> to vector<4x32xf32>
    %194 = vector.extract_strided_slice %184 {offsets = [0, 32], sizes = [4, 32], strides = [1, 1]} : vector<4x96xf32> to vector<4x32xf32>
    %195 = arith.addf %193, %194 : vector<4x32xf32>
    %196 = arith.negf %195 : vector<4x32xf32>
    %197 = math.exp %196 : vector<4x32xf32>
    %cst_48 = arith.constant 1.000000e+00 : f32
    %198 = vector.broadcast %cst_48 : f32 to vector<4x32xf32>
    %199 = arith.addf %198, %197 : vector<4x32xf32>
    %200 = arith.divf %198, %199 : vector<4x32xf32>
    %201 = vector.extract_strided_slice %182 {offsets = [0, 64], sizes = [4, 32], strides = [1, 1]} : vector<4x96xf32> to vector<4x32xf32>
    %202 = vector.extract_strided_slice %184 {offsets = [0, 64], sizes = [4, 32], strides = [1, 1]} : vector<4x96xf32> to vector<4x32xf32>
    %203 = vector.broadcast %13 : vector<1x32xf32> to vector<4x32xf32>
    %204 = arith.addf %202, %203 : vector<4x32xf32>
    %205 = arith.mulf %192, %204 : vector<4x32xf32>
    %206 = arith.addf %201, %205 : vector<4x32xf32>
    %207 = math.tanh %206 : vector<4x32xf32>
    %cst_49 = arith.constant 1.000000e+00 : f32
    %208 = vector.broadcast %cst_49 : f32 to vector<4x32xf32>
    %209 = arith.subf %208, %200 : vector<4x32xf32>
    %210 = arith.mulf %209, %207 : vector<4x32xf32>
    %211 = arith.mulf %200, %146 : vector<4x32xf32>
    %212 = arith.addf %210, %211 : vector<4x32xf32>
    %c8_50 = arith.constant 8 : index
    %c0_51 = arith.constant 0 : index
    %213 = vector.load %arg6[%c8_50, %c0_51] : memref<32x32xf32, #tpu.memory_space<vmem>>, vector<4x32xf32>
    tpu.vector_store %arg6[%c8_50, %c0_51], %212 {strides = array<i32>} : memref<32x32xf32, #tpu.memory_space<vmem>>, vector<4x32xf32>,
    %c12 = arith.constant 12 : index
    %c0_52 = arith.constant 0 : index
    %214 = vector.load %arg5[%c12, %c0_52] : memref<32x96xf32, #tpu.memory_space<vmem>>, vector<4x96xf32>
    %215 = arith.truncf %178 : vector<4x32xf32> to vector<4x32xbf16>
    %cst_53 = arith.constant dense<0.000000e+00> : vector<4x96xf32>
    %216 = tpu.matmul %215, %8, %cst_53 {dimension_numbers = #tpu.dot_dimension_numbers<[1], [0], [0], [1], [0, 0, 1, 1], [], []>} : vector<4x32xbf16>, vector<32x96xbf16>, vector<4x96xf32> -> vector<4x96xf32>
    %217 = vector.extract_strided_slice %214 {offsets = [0, 0], sizes = [4, 32], strides = [1, 1]} : vector<4x96xf32> to vector<4x32xf32>
    %218 = vector.extract_strided_slice %216 {offsets = [0, 0], sizes = [4, 32], strides = [1, 1]} : vector<4x96xf32> to vector<4x32xf32>
    %219 = arith.addf %217, %218 : vector<4x32xf32>
    %220 = arith.negf %219 : vector<4x32xf32>
    %221 = math.exp %220 : vector<4x32xf32>
    %cst_54 = arith.constant 1.000000e+00 : f32
    %222 = vector.broadcast %cst_54 : f32 to vector<4x32xf32>
    %223 = arith.addf %222, %221 : vector<4x32xf32>
    %224 = arith.divf %222, %223 : vector<4x32xf32>
    %225 = vector.extract_strided_slice %214 {offsets = [0, 32], sizes = [4, 32], strides = [1, 1]} : vector<4x96xf32> to vector<4x32xf32>
    %226 = vector.extract_strided_slice %216 {offsets = [0, 32], sizes = [4, 32], strides = [1, 1]} : vector<4x96xf32> to vector<4x32xf32>
    %227 = arith.addf %225, %226 : vector<4x32xf32>
    %228 = arith.negf %227 : vector<4x32xf32>
    %229 = math.exp %228 : vector<4x32xf32>
    %cst_55 = arith.constant 1.000000e+00 : f32
    %230 = vector.broadcast %cst_55 : f32 to vector<4x32xf32>
    %231 = arith.addf %230, %229 : vector<4x32xf32>
    %232 = arith.divf %230, %231 : vector<4x32xf32>
    %233 = vector.extract_strided_slice %214 {offsets = [0, 64], sizes = [4, 32], strides = [1, 1]} : vector<4x96xf32> to vector<4x32xf32>
    %234 = vector.extract_strided_slice %216 {offsets = [0, 64], sizes = [4, 32], strides = [1, 1]} : vector<4x96xf32> to vector<4x32xf32>
    %235 = vector.broadcast %11 : vector<1x32xf32> to vector<4x32xf32>
    %236 = arith.addf %234, %235 : vector<4x32xf32>
    %237 = arith.mulf %224, %236 : vector<4x32xf32>
    %238 = arith.addf %233, %237 : vector<4x32xf32>
    %239 = math.tanh %238 : vector<4x32xf32>
    %cst_56 = arith.constant 1.000000e+00 : f32
    %240 = vector.broadcast %cst_56 : f32 to vector<4x32xf32>
    %241 = arith.subf %240, %232 : vector<4x32xf32>
    %242 = arith.mulf %241, %239 : vector<4x32xf32>
    %243 = arith.mulf %232, %178 : vector<4x32xf32>
    %244 = arith.addf %242, %243 : vector<4x32xf32>
    %245 = arith.truncf %244 : vector<4x32xf32> to vector<4x32xbf16>
    %cst_57 = arith.constant dense<0.000000e+00> : vector<4x96xf32>
    %246 = tpu.matmul %245, %9, %cst_57 {dimension_numbers = #tpu.dot_dimension_numbers<[1], [0], [0], [1], [0, 0, 1, 1], [], []>} : vector<4x32xbf16>, vector<32x96xbf16>, vector<4x96xf32> -> vector<4x96xf32>
    %247 = vector.broadcast %12 : vector<1x96xf32> to vector<4x96xf32>
    %248 = arith.addf %246, %247 : vector<4x96xf32>
    %249 = arith.truncf %212 : vector<4x32xf32> to vector<4x32xbf16>
    %cst_58 = arith.constant dense<0.000000e+00> : vector<4x96xf32>
    %250 = tpu.matmul %249, %10, %cst_58 {dimension_numbers = #tpu.dot_dimension_numbers<[1], [0], [0], [1], [0, 0, 1, 1], [], []>} : vector<4x32xbf16>, vector<32x96xbf16>, vector<4x96xf32> -> vector<4x96xf32>
    %251 = vector.extract_strided_slice %248 {offsets = [0, 0], sizes = [4, 32], strides = [1, 1]} : vector<4x96xf32> to vector<4x32xf32>
    %252 = vector.extract_strided_slice %250 {offsets = [0, 0], sizes = [4, 32], strides = [1, 1]} : vector<4x96xf32> to vector<4x32xf32>
    %253 = arith.addf %251, %252 : vector<4x32xf32>
    %254 = arith.negf %253 : vector<4x32xf32>
    %255 = math.exp %254 : vector<4x32xf32>
    %cst_59 = arith.constant 1.000000e+00 : f32
    %256 = vector.broadcast %cst_59 : f32 to vector<4x32xf32>
    %257 = arith.addf %256, %255 : vector<4x32xf32>
    %258 = arith.divf %256, %257 : vector<4x32xf32>
    %259 = vector.extract_strided_slice %248 {offsets = [0, 32], sizes = [4, 32], strides = [1, 1]} : vector<4x96xf32> to vector<4x32xf32>
    %260 = vector.extract_strided_slice %250 {offsets = [0, 32], sizes = [4, 32], strides = [1, 1]} : vector<4x96xf32> to vector<4x32xf32>
    %261 = arith.addf %259, %260 : vector<4x32xf32>
    %262 = arith.negf %261 : vector<4x32xf32>
    %263 = math.exp %262 : vector<4x32xf32>
    %cst_60 = arith.constant 1.000000e+00 : f32
    %264 = vector.broadcast %cst_60 : f32 to vector<4x32xf32>
    %265 = arith.addf %264, %263 : vector<4x32xf32>
    %266 = arith.divf %264, %265 : vector<4x32xf32>
    %267 = vector.extract_strided_slice %248 {offsets = [0, 64], sizes = [4, 32], strides = [1, 1]} : vector<4x96xf32> to vector<4x32xf32>
    %268 = vector.extract_strided_slice %250 {offsets = [0, 64], sizes = [4, 32], strides = [1, 1]} : vector<4x96xf32> to vector<4x32xf32>
    %269 = vector.broadcast %13 : vector<1x32xf32> to vector<4x32xf32>
    %270 = arith.addf %268, %269 : vector<4x32xf32>
    %271 = arith.mulf %258, %270 : vector<4x32xf32>
    %272 = arith.addf %267, %271 : vector<4x32xf32>
    %273 = math.tanh %272 : vector<4x32xf32>
    %cst_61 = arith.constant 1.000000e+00 : f32
    %274 = vector.broadcast %cst_61 : f32 to vector<4x32xf32>
    %275 = arith.subf %274, %266 : vector<4x32xf32>
    %276 = arith.mulf %275, %273 : vector<4x32xf32>
    %277 = arith.mulf %266, %212 : vector<4x32xf32>
    %278 = arith.addf %276, %277 : vector<4x32xf32>
    %c12_62 = arith.constant 12 : index
    %c0_63 = arith.constant 0 : index
    %279 = vector.load %arg6[%c12_62, %c0_63] : memref<32x32xf32, #tpu.memory_space<vmem>>, vector<4x32xf32>
    tpu.vector_store %arg6[%c12_62, %c0_63], %278 {strides = array<i32>} : memref<32x32xf32, #tpu.memory_space<vmem>>, vector<4x32xf32>,
    %c16 = arith.constant 16 : index
    %c0_64 = arith.constant 0 : index
    %280 = vector.load %arg5[%c16, %c0_64] : memref<32x96xf32, #tpu.memory_space<vmem>>, vector<4x96xf32>
    %281 = arith.truncf %244 : vector<4x32xf32> to vector<4x32xbf16>
    %cst_65 = arith.constant dense<0.000000e+00> : vector<4x96xf32>
    %282 = tpu.matmul %281, %8, %cst_65 {dimension_numbers = #tpu.dot_dimension_numbers<[1], [0], [0], [1], [0, 0, 1, 1], [], []>} : vector<4x32xbf16>, vector<32x96xbf16>, vector<4x96xf32> -> vector<4x96xf32>
    %283 = vector.extract_strided_slice %280 {offsets = [0, 0], sizes = [4, 32], strides = [1, 1]} : vector<4x96xf32> to vector<4x32xf32>
    %284 = vector.extract_strided_slice %282 {offsets = [0, 0], sizes = [4, 32], strides = [1, 1]} : vector<4x96xf32> to vector<4x32xf32>
    %285 = arith.addf %283, %284 : vector<4x32xf32>
    %286 = arith.negf %285 : vector<4x32xf32>
    %287 = math.exp %286 : vector<4x32xf32>
    %cst_66 = arith.constant 1.000000e+00 : f32
    %288 = vector.broadcast %cst_66 : f32 to vector<4x32xf32>
    %289 = arith.addf %288, %287 : vector<4x32xf32>
    %290 = arith.divf %288, %289 : vector<4x32xf32>
    %291 = vector.extract_strided_slice %280 {offsets = [0, 32], sizes = [4, 32], strides = [1, 1]} : vector<4x96xf32> to vector<4x32xf32>
    %292 = vector.extract_strided_slice %282 {offsets = [0, 32], sizes = [4, 32], strides = [1, 1]} : vector<4x96xf32> to vector<4x32xf32>
    %293 = arith.addf %291, %292 : vector<4x32xf32>
    %294 = arith.negf %293 : vector<4x32xf32>
    %295 = math.exp %294 : vector<4x32xf32>
    %cst_67 = arith.constant 1.000000e+00 : f32
    %296 = vector.broadcast %cst_67 : f32 to vector<4x32xf32>
    %297 = arith.addf %296, %295 : vector<4x32xf32>
    %298 = arith.divf %296, %297 : vector<4x32xf32>
    %299 = vector.extract_strided_slice %280 {offsets = [0, 64], sizes = [4, 32], strides = [1, 1]} : vector<4x96xf32> to vector<4x32xf32>
    %300 = vector.extract_strided_slice %282 {offsets = [0, 64], sizes = [4, 32], strides = [1, 1]} : vector<4x96xf32> to vector<4x32xf32>
    %301 = vector.broadcast %11 : vector<1x32xf32> to vector<4x32xf32>
    %302 = arith.addf %300, %301 : vector<4x32xf32>
    %303 = arith.mulf %290, %302 : vector<4x32xf32>
    %304 = arith.addf %299, %303 : vector<4x32xf32>
    %305 = math.tanh %304 : vector<4x32xf32>
    %cst_68 = arith.constant 1.000000e+00 : f32
    %306 = vector.broadcast %cst_68 : f32 to vector<4x32xf32>
    %307 = arith.subf %306, %298 : vector<4x32xf32>
    %308 = arith.mulf %307, %305 : vector<4x32xf32>
    %309 = arith.mulf %298, %244 : vector<4x32xf32>
    %310 = arith.addf %308, %309 : vector<4x32xf32>
    %311 = arith.truncf %310 : vector<4x32xf32> to vector<4x32xbf16>
    %cst_69 = arith.constant dense<0.000000e+00> : vector<4x96xf32>
    %312 = tpu.matmul %311, %9, %cst_69 {dimension_numbers = #tpu.dot_dimension_numbers<[1], [0], [0], [1], [0, 0, 1, 1], [], []>} : vector<4x32xbf16>, vector<32x96xbf16>, vector<4x96xf32> -> vector<4x96xf32>
    %313 = vector.broadcast %12 : vector<1x96xf32> to vector<4x96xf32>
    %314 = arith.addf %312, %313 : vector<4x96xf32>
    %315 = arith.truncf %278 : vector<4x32xf32> to vector<4x32xbf16>
    %cst_70 = arith.constant dense<0.000000e+00> : vector<4x96xf32>
    %316 = tpu.matmul %315, %10, %cst_70 {dimension_numbers = #tpu.dot_dimension_numbers<[1], [0], [0], [1], [0, 0, 1, 1], [], []>} : vector<4x32xbf16>, vector<32x96xbf16>, vector<4x96xf32> -> vector<4x96xf32>
    %317 = vector.extract_strided_slice %314 {offsets = [0, 0], sizes = [4, 32], strides = [1, 1]} : vector<4x96xf32> to vector<4x32xf32>
    %318 = vector.extract_strided_slice %316 {offsets = [0, 0], sizes = [4, 32], strides = [1, 1]} : vector<4x96xf32> to vector<4x32xf32>
    %319 = arith.addf %317, %318 : vector<4x32xf32>
    %320 = arith.negf %319 : vector<4x32xf32>
    %321 = math.exp %320 : vector<4x32xf32>
    %cst_71 = arith.constant 1.000000e+00 : f32
    %322 = vector.broadcast %cst_71 : f32 to vector<4x32xf32>
    %323 = arith.addf %322, %321 : vector<4x32xf32>
    %324 = arith.divf %322, %323 : vector<4x32xf32>
    %325 = vector.extract_strided_slice %314 {offsets = [0, 32], sizes = [4, 32], strides = [1, 1]} : vector<4x96xf32> to vector<4x32xf32>
    %326 = vector.extract_strided_slice %316 {offsets = [0, 32], sizes = [4, 32], strides = [1, 1]} : vector<4x96xf32> to vector<4x32xf32>
    %327 = arith.addf %325, %326 : vector<4x32xf32>
    %328 = arith.negf %327 : vector<4x32xf32>
    %329 = math.exp %328 : vector<4x32xf32>
    %cst_72 = arith.constant 1.000000e+00 : f32
    %330 = vector.broadcast %cst_72 : f32 to vector<4x32xf32>
    %331 = arith.addf %330, %329 : vector<4x32xf32>
    %332 = arith.divf %330, %331 : vector<4x32xf32>
    %333 = vector.extract_strided_slice %314 {offsets = [0, 64], sizes = [4, 32], strides = [1, 1]} : vector<4x96xf32> to vector<4x32xf32>
    %334 = vector.extract_strided_slice %316 {offsets = [0, 64], sizes = [4, 32], strides = [1, 1]} : vector<4x96xf32> to vector<4x32xf32>
    %335 = vector.broadcast %13 : vector<1x32xf32> to vector<4x32xf32>
    %336 = arith.addf %334, %335 : vector<4x32xf32>
    %337 = arith.mulf %324, %336 : vector<4x32xf32>
    %338 = arith.addf %333, %337 : vector<4x32xf32>
    %339 = math.tanh %338 : vector<4x32xf32>
    %cst_73 = arith.constant 1.000000e+00 : f32
    %340 = vector.broadcast %cst_73 : f32 to vector<4x32xf32>
    %341 = arith.subf %340, %332 : vector<4x32xf32>
    %342 = arith.mulf %341, %339 : vector<4x32xf32>
    %343 = arith.mulf %332, %278 : vector<4x32xf32>
    %344 = arith.addf %342, %343 : vector<4x32xf32>
    %c16_74 = arith.constant 16 : index
    %c0_75 = arith.constant 0 : index
    %345 = vector.load %arg6[%c16_74, %c0_75] : memref<32x32xf32, #tpu.memory_space<vmem>>, vector<4x32xf32>
    tpu.vector_store %arg6[%c16_74, %c0_75], %344 {strides = array<i32>} : memref<32x32xf32, #tpu.memory_space<vmem>>, vector<4x32xf32>,
    %c20 = arith.constant 20 : index
    %c0_76 = arith.constant 0 : index
    %346 = vector.load %arg5[%c20, %c0_76] : memref<32x96xf32, #tpu.memory_space<vmem>>, vector<4x96xf32>
    %347 = arith.truncf %310 : vector<4x32xf32> to vector<4x32xbf16>
    %cst_77 = arith.constant dense<0.000000e+00> : vector<4x96xf32>
    %348 = tpu.matmul %347, %8, %cst_77 {dimension_numbers = #tpu.dot_dimension_numbers<[1], [0], [0], [1], [0, 0, 1, 1], [], []>} : vector<4x32xbf16>, vector<32x96xbf16>, vector<4x96xf32> -> vector<4x96xf32>
    %349 = vector.extract_strided_slice %346 {offsets = [0, 0], sizes = [4, 32], strides = [1, 1]} : vector<4x96xf32> to vector<4x32xf32>
    %350 = vector.extract_strided_slice %348 {offsets = [0, 0], sizes = [4, 32], strides = [1, 1]} : vector<4x96xf32> to vector<4x32xf32>
    %351 = arith.addf %349, %350 : vector<4x32xf32>
    %352 = arith.negf %351 : vector<4x32xf32>
    %353 = math.exp %352 : vector<4x32xf32>
    %cst_78 = arith.constant 1.000000e+00 : f32
    %354 = vector.broadcast %cst_78 : f32 to vector<4x32xf32>
    %355 = arith.addf %354, %353 : vector<4x32xf32>
    %356 = arith.divf %354, %355 : vector<4x32xf32>
    %357 = vector.extract_strided_slice %346 {offsets = [0, 32], sizes = [4, 32], strides = [1, 1]} : vector<4x96xf32> to vector<4x32xf32>
    %358 = vector.extract_strided_slice %348 {offsets = [0, 32], sizes = [4, 32], strides = [1, 1]} : vector<4x96xf32> to vector<4x32xf32>
    %359 = arith.addf %357, %358 : vector<4x32xf32>
    %360 = arith.negf %359 : vector<4x32xf32>
    %361 = math.exp %360 : vector<4x32xf32>
    %cst_79 = arith.constant 1.000000e+00 : f32
    %362 = vector.broadcast %cst_79 : f32 to vector<4x32xf32>
    %363 = arith.addf %362, %361 : vector<4x32xf32>
    %364 = arith.divf %362, %363 : vector<4x32xf32>
    %365 = vector.extract_strided_slice %346 {offsets = [0, 64], sizes = [4, 32], strides = [1, 1]} : vector<4x96xf32> to vector<4x32xf32>
    %366 = vector.extract_strided_slice %348 {offsets = [0, 64], sizes = [4, 32], strides = [1, 1]} : vector<4x96xf32> to vector<4x32xf32>
    %367 = vector.broadcast %11 : vector<1x32xf32> to vector<4x32xf32>
    %368 = arith.addf %366, %367 : vector<4x32xf32>
    %369 = arith.mulf %356, %368 : vector<4x32xf32>
    %370 = arith.addf %365, %369 : vector<4x32xf32>
    %371 = math.tanh %370 : vector<4x32xf32>
    %cst_80 = arith.constant 1.000000e+00 : f32
    %372 = vector.broadcast %cst_80 : f32 to vector<4x32xf32>
    %373 = arith.subf %372, %364 : vector<4x32xf32>
    %374 = arith.mulf %373, %371 : vector<4x32xf32>
    %375 = arith.mulf %364, %310 : vector<4x32xf32>
    %376 = arith.addf %374, %375 : vector<4x32xf32>
    %377 = arith.truncf %376 : vector<4x32xf32> to vector<4x32xbf16>
    %cst_81 = arith.constant dense<0.000000e+00> : vector<4x96xf32>
    %378 = tpu.matmul %377, %9, %cst_81 {dimension_numbers = #tpu.dot_dimension_numbers<[1], [0], [0], [1], [0, 0, 1, 1], [], []>} : vector<4x32xbf16>, vector<32x96xbf16>, vector<4x96xf32> -> vector<4x96xf32>
    %379 = vector.broadcast %12 : vector<1x96xf32> to vector<4x96xf32>
    %380 = arith.addf %378, %379 : vector<4x96xf32>
    %381 = arith.truncf %344 : vector<4x32xf32> to vector<4x32xbf16>
    %cst_82 = arith.constant dense<0.000000e+00> : vector<4x96xf32>
    %382 = tpu.matmul %381, %10, %cst_82 {dimension_numbers = #tpu.dot_dimension_numbers<[1], [0], [0], [1], [0, 0, 1, 1], [], []>} : vector<4x32xbf16>, vector<32x96xbf16>, vector<4x96xf32> -> vector<4x96xf32>
    %383 = vector.extract_strided_slice %380 {offsets = [0, 0], sizes = [4, 32], strides = [1, 1]} : vector<4x96xf32> to vector<4x32xf32>
    %384 = vector.extract_strided_slice %382 {offsets = [0, 0], sizes = [4, 32], strides = [1, 1]} : vector<4x96xf32> to vector<4x32xf32>
    %385 = arith.addf %383, %384 : vector<4x32xf32>
    %386 = arith.negf %385 : vector<4x32xf32>
    %387 = math.exp %386 : vector<4x32xf32>
    %cst_83 = arith.constant 1.000000e+00 : f32
    %388 = vector.broadcast %cst_83 : f32 to vector<4x32xf32>
    %389 = arith.addf %388, %387 : vector<4x32xf32>
    %390 = arith.divf %388, %389 : vector<4x32xf32>
    %391 = vector.extract_strided_slice %380 {offsets = [0, 32], sizes = [4, 32], strides = [1, 1]} : vector<4x96xf32> to vector<4x32xf32>
    %392 = vector.extract_strided_slice %382 {offsets = [0, 32], sizes = [4, 32], strides = [1, 1]} : vector<4x96xf32> to vector<4x32xf32>
    %393 = arith.addf %391, %392 : vector<4x32xf32>
    %394 = arith.negf %393 : vector<4x32xf32>
    %395 = math.exp %394 : vector<4x32xf32>
    %cst_84 = arith.constant 1.000000e+00 : f32
    %396 = vector.broadcast %cst_84 : f32 to vector<4x32xf32>
    %397 = arith.addf %396, %395 : vector<4x32xf32>
    %398 = arith.divf %396, %397 : vector<4x32xf32>
    %399 = vector.extract_strided_slice %380 {offsets = [0, 64], sizes = [4, 32], strides = [1, 1]} : vector<4x96xf32> to vector<4x32xf32>
    %400 = vector.extract_strided_slice %382 {offsets = [0, 64], sizes = [4, 32], strides = [1, 1]} : vector<4x96xf32> to vector<4x32xf32>
    %401 = vector.broadcast %13 : vector<1x32xf32> to vector<4x32xf32>
    %402 = arith.addf %400, %401 : vector<4x32xf32>
    %403 = arith.mulf %390, %402 : vector<4x32xf32>
    %404 = arith.addf %399, %403 : vector<4x32xf32>
    %405 = math.tanh %404 : vector<4x32xf32>
    %cst_85 = arith.constant 1.000000e+00 : f32
    %406 = vector.broadcast %cst_85 : f32 to vector<4x32xf32>
    %407 = arith.subf %406, %398 : vector<4x32xf32>
    %408 = arith.mulf %407, %405 : vector<4x32xf32>
    %409 = arith.mulf %398, %344 : vector<4x32xf32>
    %410 = arith.addf %408, %409 : vector<4x32xf32>
    %c20_86 = arith.constant 20 : index
    %c0_87 = arith.constant 0 : index
    %411 = vector.load %arg6[%c20_86, %c0_87] : memref<32x32xf32, #tpu.memory_space<vmem>>, vector<4x32xf32>
    tpu.vector_store %arg6[%c20_86, %c0_87], %410 {strides = array<i32>} : memref<32x32xf32, #tpu.memory_space<vmem>>, vector<4x32xf32>,
    %c24 = arith.constant 24 : index
    %c0_88 = arith.constant 0 : index
    %412 = vector.load %arg5[%c24, %c0_88] : memref<32x96xf32, #tpu.memory_space<vmem>>, vector<4x96xf32>
    %413 = arith.truncf %376 : vector<4x32xf32> to vector<4x32xbf16>
    %cst_89 = arith.constant dense<0.000000e+00> : vector<4x96xf32>
    %414 = tpu.matmul %413, %8, %cst_89 {dimension_numbers = #tpu.dot_dimension_numbers<[1], [0], [0], [1], [0, 0, 1, 1], [], []>} : vector<4x32xbf16>, vector<32x96xbf16>, vector<4x96xf32> -> vector<4x96xf32>
    %415 = vector.extract_strided_slice %412 {offsets = [0, 0], sizes = [4, 32], strides = [1, 1]} : vector<4x96xf32> to vector<4x32xf32>
    %416 = vector.extract_strided_slice %414 {offsets = [0, 0], sizes = [4, 32], strides = [1, 1]} : vector<4x96xf32> to vector<4x32xf32>
    %417 = arith.addf %415, %416 : vector<4x32xf32>
    %418 = arith.negf %417 : vector<4x32xf32>
    %419 = math.exp %418 : vector<4x32xf32>
    %cst_90 = arith.constant 1.000000e+00 : f32
    %420 = vector.broadcast %cst_90 : f32 to vector<4x32xf32>
    %421 = arith.addf %420, %419 : vector<4x32xf32>
    %422 = arith.divf %420, %421 : vector<4x32xf32>
    %423 = vector.extract_strided_slice %412 {offsets = [0, 32], sizes = [4, 32], strides = [1, 1]} : vector<4x96xf32> to vector<4x32xf32>
    %424 = vector.extract_strided_slice %414 {offsets = [0, 32], sizes = [4, 32], strides = [1, 1]} : vector<4x96xf32> to vector<4x32xf32>
    %425 = arith.addf %423, %424 : vector<4x32xf32>
    %426 = arith.negf %425 : vector<4x32xf32>
    %427 = math.exp %426 : vector<4x32xf32>
    %cst_91 = arith.constant 1.000000e+00 : f32
    %428 = vector.broadcast %cst_91 : f32 to vector<4x32xf32>
    %429 = arith.addf %428, %427 : vector<4x32xf32>
    %430 = arith.divf %428, %429 : vector<4x32xf32>
    %431 = vector.extract_strided_slice %412 {offsets = [0, 64], sizes = [4, 32], strides = [1, 1]} : vector<4x96xf32> to vector<4x32xf32>
    %432 = vector.extract_strided_slice %414 {offsets = [0, 64], sizes = [4, 32], strides = [1, 1]} : vector<4x96xf32> to vector<4x32xf32>
    %433 = vector.broadcast %11 : vector<1x32xf32> to vector<4x32xf32>
    %434 = arith.addf %432, %433 : vector<4x32xf32>
    %435 = arith.mulf %422, %434 : vector<4x32xf32>
    %436 = arith.addf %431, %435 : vector<4x32xf32>
    %437 = math.tanh %436 : vector<4x32xf32>
    %cst_92 = arith.constant 1.000000e+00 : f32
    %438 = vector.broadcast %cst_92 : f32 to vector<4x32xf32>
    %439 = arith.subf %438, %430 : vector<4x32xf32>
    %440 = arith.mulf %439, %437 : vector<4x32xf32>
    %441 = arith.mulf %430, %376 : vector<4x32xf32>
    %442 = arith.addf %440, %441 : vector<4x32xf32>
    %443 = arith.truncf %442 : vector<4x32xf32> to vector<4x32xbf16>
    %cst_93 = arith.constant dense<0.000000e+00> : vector<4x96xf32>
    %444 = tpu.matmul %443, %9, %cst_93 {dimension_numbers = #tpu.dot_dimension_numbers<[1], [0], [0], [1], [0, 0, 1, 1], [], []>} : vector<4x32xbf16>, vector<32x96xbf16>, vector<4x96xf32> -> vector<4x96xf32>
    %445 = vector.broadcast %12 : vector<1x96xf32> to vector<4x96xf32>
    %446 = arith.addf %444, %445 : vector<4x96xf32>
    %447 = arith.truncf %410 : vector<4x32xf32> to vector<4x32xbf16>
    %cst_94 = arith.constant dense<0.000000e+00> : vector<4x96xf32>
    %448 = tpu.matmul %447, %10, %cst_94 {dimension_numbers = #tpu.dot_dimension_numbers<[1], [0], [0], [1], [0, 0, 1, 1], [], []>} : vector<4x32xbf16>, vector<32x96xbf16>, vector<4x96xf32> -> vector<4x96xf32>
    %449 = vector.extract_strided_slice %446 {offsets = [0, 0], sizes = [4, 32], strides = [1, 1]} : vector<4x96xf32> to vector<4x32xf32>
    %450 = vector.extract_strided_slice %448 {offsets = [0, 0], sizes = [4, 32], strides = [1, 1]} : vector<4x96xf32> to vector<4x32xf32>
    %451 = arith.addf %449, %450 : vector<4x32xf32>
    %452 = arith.negf %451 : vector<4x32xf32>
    %453 = math.exp %452 : vector<4x32xf32>
    %cst_95 = arith.constant 1.000000e+00 : f32
    %454 = vector.broadcast %cst_95 : f32 to vector<4x32xf32>
    %455 = arith.addf %454, %453 : vector<4x32xf32>
    %456 = arith.divf %454, %455 : vector<4x32xf32>
    %457 = vector.extract_strided_slice %446 {offsets = [0, 32], sizes = [4, 32], strides = [1, 1]} : vector<4x96xf32> to vector<4x32xf32>
    %458 = vector.extract_strided_slice %448 {offsets = [0, 32], sizes = [4, 32], strides = [1, 1]} : vector<4x96xf32> to vector<4x32xf32>
    %459 = arith.addf %457, %458 : vector<4x32xf32>
    %460 = arith.negf %459 : vector<4x32xf32>
    %461 = math.exp %460 : vector<4x32xf32>
    %cst_96 = arith.constant 1.000000e+00 : f32
    %462 = vector.broadcast %cst_96 : f32 to vector<4x32xf32>
    %463 = arith.addf %462, %461 : vector<4x32xf32>
    %464 = arith.divf %462, %463 : vector<4x32xf32>
    %465 = vector.extract_strided_slice %446 {offsets = [0, 64], sizes = [4, 32], strides = [1, 1]} : vector<4x96xf32> to vector<4x32xf32>
    %466 = vector.extract_strided_slice %448 {offsets = [0, 64], sizes = [4, 32], strides = [1, 1]} : vector<4x96xf32> to vector<4x32xf32>
    %467 = vector.broadcast %13 : vector<1x32xf32> to vector<4x32xf32>
    %468 = arith.addf %466, %467 : vector<4x32xf32>
    %469 = arith.mulf %456, %468 : vector<4x32xf32>
    %470 = arith.addf %465, %469 : vector<4x32xf32>
    %471 = math.tanh %470 : vector<4x32xf32>
    %cst_97 = arith.constant 1.000000e+00 : f32
    %472 = vector.broadcast %cst_97 : f32 to vector<4x32xf32>
    %473 = arith.subf %472, %464 : vector<4x32xf32>
    %474 = arith.mulf %473, %471 : vector<4x32xf32>
    %475 = arith.mulf %464, %410 : vector<4x32xf32>
    %476 = arith.addf %474, %475 : vector<4x32xf32>
    %c24_98 = arith.constant 24 : index
    %c0_99 = arith.constant 0 : index
    %477 = vector.load %arg6[%c24_98, %c0_99] : memref<32x32xf32, #tpu.memory_space<vmem>>, vector<4x32xf32>
    tpu.vector_store %arg6[%c24_98, %c0_99], %476 {strides = array<i32>} : memref<32x32xf32, #tpu.memory_space<vmem>>, vector<4x32xf32>,
    %c28 = arith.constant 28 : index
    %c0_100 = arith.constant 0 : index
    %478 = vector.load %arg5[%c28, %c0_100] : memref<32x96xf32, #tpu.memory_space<vmem>>, vector<4x96xf32>
    %479 = arith.truncf %442 : vector<4x32xf32> to vector<4x32xbf16>
    %cst_101 = arith.constant dense<0.000000e+00> : vector<4x96xf32>
    %480 = tpu.matmul %479, %8, %cst_101 {dimension_numbers = #tpu.dot_dimension_numbers<[1], [0], [0], [1], [0, 0, 1, 1], [], []>} : vector<4x32xbf16>, vector<32x96xbf16>, vector<4x96xf32> -> vector<4x96xf32>
    %481 = vector.extract_strided_slice %478 {offsets = [0, 0], sizes = [4, 32], strides = [1, 1]} : vector<4x96xf32> to vector<4x32xf32>
    %482 = vector.extract_strided_slice %480 {offsets = [0, 0], sizes = [4, 32], strides = [1, 1]} : vector<4x96xf32> to vector<4x32xf32>
    %483 = arith.addf %481, %482 : vector<4x32xf32>
    %484 = arith.negf %483 : vector<4x32xf32>
    %485 = math.exp %484 : vector<4x32xf32>
    %cst_102 = arith.constant 1.000000e+00 : f32
    %486 = vector.broadcast %cst_102 : f32 to vector<4x32xf32>
    %487 = arith.addf %486, %485 : vector<4x32xf32>
    %488 = arith.divf %486, %487 : vector<4x32xf32>
    %489 = vector.extract_strided_slice %478 {offsets = [0, 32], sizes = [4, 32], strides = [1, 1]} : vector<4x96xf32> to vector<4x32xf32>
    %490 = vector.extract_strided_slice %480 {offsets = [0, 32], sizes = [4, 32], strides = [1, 1]} : vector<4x96xf32> to vector<4x32xf32>
    %491 = arith.addf %489, %490 : vector<4x32xf32>
    %492 = arith.negf %491 : vector<4x32xf32>
    %493 = math.exp %492 : vector<4x32xf32>
    %cst_103 = arith.constant 1.000000e+00 : f32
    %494 = vector.broadcast %cst_103 : f32 to vector<4x32xf32>
    %495 = arith.addf %494, %493 : vector<4x32xf32>
    %496 = arith.divf %494, %495 : vector<4x32xf32>
    %497 = vector.extract_strided_slice %478 {offsets = [0, 64], sizes = [4, 32], strides = [1, 1]} : vector<4x96xf32> to vector<4x32xf32>
    %498 = vector.extract_strided_slice %480 {offsets = [0, 64], sizes = [4, 32], strides = [1, 1]} : vector<4x96xf32> to vector<4x32xf32>
    %499 = vector.broadcast %11 : vector<1x32xf32> to vector<4x32xf32>
    %500 = arith.addf %498, %499 : vector<4x32xf32>
    %501 = arith.mulf %488, %500 : vector<4x32xf32>
    %502 = arith.addf %497, %501 : vector<4x32xf32>
    %503 = math.tanh %502 : vector<4x32xf32>
    %cst_104 = arith.constant 1.000000e+00 : f32
    %504 = vector.broadcast %cst_104 : f32 to vector<4x32xf32>
    %505 = arith.subf %504, %496 : vector<4x32xf32>
    %506 = arith.mulf %505, %503 : vector<4x32xf32>
    %507 = arith.mulf %496, %442 : vector<4x32xf32>
    %508 = arith.addf %506, %507 : vector<4x32xf32>
    %509 = arith.truncf %508 : vector<4x32xf32> to vector<4x32xbf16>
    %cst_105 = arith.constant dense<0.000000e+00> : vector<4x96xf32>
    %510 = tpu.matmul %509, %9, %cst_105 {dimension_numbers = #tpu.dot_dimension_numbers<[1], [0], [0], [1], [0, 0, 1, 1], [], []>} : vector<4x32xbf16>, vector<32x96xbf16>, vector<4x96xf32> -> vector<4x96xf32>
    %511 = vector.broadcast %12 : vector<1x96xf32> to vector<4x96xf32>
    %512 = arith.addf %510, %511 : vector<4x96xf32>
    %513 = arith.truncf %476 : vector<4x32xf32> to vector<4x32xbf16>
    %cst_106 = arith.constant dense<0.000000e+00> : vector<4x96xf32>
    %514 = tpu.matmul %513, %10, %cst_106 {dimension_numbers = #tpu.dot_dimension_numbers<[1], [0], [0], [1], [0, 0, 1, 1], [], []>} : vector<4x32xbf16>, vector<32x96xbf16>, vector<4x96xf32> -> vector<4x96xf32>
    %515 = vector.extract_strided_slice %512 {offsets = [0, 0], sizes = [4, 32], strides = [1, 1]} : vector<4x96xf32> to vector<4x32xf32>
    %516 = vector.extract_strided_slice %514 {offsets = [0, 0], sizes = [4, 32], strides = [1, 1]} : vector<4x96xf32> to vector<4x32xf32>
    %517 = arith.addf %515, %516 : vector<4x32xf32>
    %518 = arith.negf %517 : vector<4x32xf32>
    %519 = math.exp %518 : vector<4x32xf32>
    %cst_107 = arith.constant 1.000000e+00 : f32
    %520 = vector.broadcast %cst_107 : f32 to vector<4x32xf32>
    %521 = arith.addf %520, %519 : vector<4x32xf32>
    %522 = arith.divf %520, %521 : vector<4x32xf32>
    %523 = vector.extract_strided_slice %512 {offsets = [0, 32], sizes = [4, 32], strides = [1, 1]} : vector<4x96xf32> to vector<4x32xf32>
    %524 = vector.extract_strided_slice %514 {offsets = [0, 32], sizes = [4, 32], strides = [1, 1]} : vector<4x96xf32> to vector<4x32xf32>
    %525 = arith.addf %523, %524 : vector<4x32xf32>
    %526 = arith.negf %525 : vector<4x32xf32>
    %527 = math.exp %526 : vector<4x32xf32>
    %cst_108 = arith.constant 1.000000e+00 : f32
    %528 = vector.broadcast %cst_108 : f32 to vector<4x32xf32>
    %529 = arith.addf %528, %527 : vector<4x32xf32>
    %530 = arith.divf %528, %529 : vector<4x32xf32>
    %531 = vector.extract_strided_slice %512 {offsets = [0, 64], sizes = [4, 32], strides = [1, 1]} : vector<4x96xf32> to vector<4x32xf32>
    %532 = vector.extract_strided_slice %514 {offsets = [0, 64], sizes = [4, 32], strides = [1, 1]} : vector<4x96xf32> to vector<4x32xf32>
    %533 = vector.broadcast %13 : vector<1x32xf32> to vector<4x32xf32>
    %534 = arith.addf %532, %533 : vector<4x32xf32>
    %535 = arith.mulf %522, %534 : vector<4x32xf32>
    %536 = arith.addf %531, %535 : vector<4x32xf32>
    %537 = math.tanh %536 : vector<4x32xf32>
    %cst_109 = arith.constant 1.000000e+00 : f32
    %538 = vector.broadcast %cst_109 : f32 to vector<4x32xf32>
    %539 = arith.subf %538, %530 : vector<4x32xf32>
    %540 = arith.mulf %539, %537 : vector<4x32xf32>
    %541 = arith.mulf %530, %476 : vector<4x32xf32>
    %542 = arith.addf %540, %541 : vector<4x32xf32>
    %c28_110 = arith.constant 28 : index
    %c0_111 = arith.constant 0 : index
    %543 = vector.load %arg6[%c28_110, %c0_111] : memref<32x32xf32, #tpu.memory_space<vmem>>, vector<4x32xf32>
    tpu.vector_store %arg6[%c28_110, %c0_111], %542 {strides = array<i32>} : memref<32x32xf32, #tpu.memory_space<vmem>>, vector<4x32xf32>,
    %c0_112 = arith.constant 0 : index
    %c0_113 = arith.constant 0 : index
    %544 = vector.load %arg6[%c0_112, %c0_113] : memref<32x32xf32, #tpu.memory_space<vmem>>, vector<32x32xf32>
    %c96 = arith.constant 96 : index
    %c0_114 = arith.constant 0 : index
    %545 = vector.load %arg1[%c96, %c0_114] : memref<256x96xbf16, #tpu.memory_space<vmem>>, vector<32x40xbf16>
    %c4_115 = arith.constant 4 : index
    %c0_116 = arith.constant 0 : index
    %546 = vector.load %arg2[%c4_115, %c0_116] : memref<11x96xf32, #tpu.memory_space<vmem>>, vector<1x40xf32>
    %547 = arith.truncf %544 : vector<32x32xf32> to vector<32x32xbf16>
    %cst_117 = arith.constant dense<0.000000e+00> : vector<32x40xf32>
    %548 = tpu.matmul %547, %545, %cst_117 {dimension_numbers = #tpu.dot_dimension_numbers<[1], [0], [0], [1], [0, 0, 1, 1], [], []>} : vector<32x32xbf16>, vector<32x40xbf16>, vector<32x40xf32> -> vector<32x40xf32>
    %549 = vector.broadcast %546 : vector<1x40xf32> to vector<32x40xf32>
    %550 = arith.addf %548, %549 : vector<32x40xf32>
    %551 = math.tanh %550 : vector<32x40xf32>
    %c192 = arith.constant 192 : index
    %c0_118 = arith.constant 0 : index
    %552 = vector.load %arg1[%c192, %c0_118] : memref<256x96xbf16, #tpu.memory_space<vmem>>, vector<40x4xbf16>
    %c5 = arith.constant 5 : index
    %c0_119 = arith.constant 0 : index
    %553 = vector.load %arg2[%c5, %c0_119] : memref<11x96xf32, #tpu.memory_space<vmem>>, vector<1x4xf32>
    %554 = arith.truncf %551 : vector<32x40xf32> to vector<32x40xbf16>
    %cst_120 = arith.constant dense<0.000000e+00> : vector<32x4xf32>
    %555 = tpu.matmul %554, %552, %cst_120 {dimension_numbers = #tpu.dot_dimension_numbers<[1], [0], [0], [1], [0, 0, 1, 1], [], []>} : vector<32x40xbf16>, vector<40x4xbf16>, vector<32x4xf32> -> vector<32x4xf32>
    %556 = vector.broadcast %553 : vector<1x4xf32> to vector<32x4xf32>
    %557 = arith.addf %555, %556 : vector<32x4xf32>
    %558 = vector.extract_strided_slice %557 {offsets = [0, 0], sizes = [4, 4], strides = [1, 1]} : vector<32x4xf32> to vector<4x4xf32>
    %c0_121 = arith.constant 0 : index
    %c0_122 = arith.constant 0 : index
    %559 = vector.load %arg3[%c0_121, %c0_122] : memref<4x32xf32, #tpu.memory_space<vmem>>, vector<4x4xf32>
    tpu.vector_store %arg3[%c0_121, %c0_122], %558 {strides = array<i32>} : memref<4x32xf32, #tpu.memory_space<vmem>>, vector<4x4xf32>,
    %560 = vector.extract_strided_slice %557 {offsets = [4, 0], sizes = [4, 4], strides = [1, 1]} : vector<32x4xf32> to vector<4x4xf32>
    %c0_123 = arith.constant 0 : index
    %c4_124 = arith.constant 4 : index
    %561 = vector.load %arg3[%c0_123, %c4_124] : memref<4x32xf32, #tpu.memory_space<vmem>>, vector<4x4xf32>
    tpu.vector_store %arg3[%c0_123, %c4_124], %560 {strides = array<i32>} : memref<4x32xf32, #tpu.memory_space<vmem>>, vector<4x4xf32>,
    %562 = vector.extract_strided_slice %557 {offsets = [8, 0], sizes = [4, 4], strides = [1, 1]} : vector<32x4xf32> to vector<4x4xf32>
    %c0_125 = arith.constant 0 : index
    %c8_126 = arith.constant 8 : index
    %563 = vector.load %arg3[%c0_125, %c8_126] : memref<4x32xf32, #tpu.memory_space<vmem>>, vector<4x4xf32>
    tpu.vector_store %arg3[%c0_125, %c8_126], %562 {strides = array<i32>} : memref<4x32xf32, #tpu.memory_space<vmem>>, vector<4x4xf32>,
    %564 = vector.extract_strided_slice %557 {offsets = [12, 0], sizes = [4, 4], strides = [1, 1]} : vector<32x4xf32> to vector<4x4xf32>
    %c0_127 = arith.constant 0 : index
    %c12_128 = arith.constant 12 : index
    %565 = vector.load %arg3[%c0_127, %c12_128] : memref<4x32xf32, #tpu.memory_space<vmem>>, vector<4x4xf32>
    tpu.vector_store %arg3[%c0_127, %c12_128], %564 {strides = array<i32>} : memref<4x32xf32, #tpu.memory_space<vmem>>, vector<4x4xf32>,
    %566 = vector.extract_strided_slice %557 {offsets = [16, 0], sizes = [4, 4], strides = [1, 1]} : vector<32x4xf32> to vector<4x4xf32>
    %c0_129 = arith.constant 0 : index
    %c16_130 = arith.constant 16 : index
    %567 = vector.load %arg3[%c0_129, %c16_130] : memref<4x32xf32, #tpu.memory_space<vmem>>, vector<4x4xf32>
    tpu.vector_store %arg3[%c0_129, %c16_130], %566 {strides = array<i32>} : memref<4x32xf32, #tpu.memory_space<vmem>>, vector<4x4xf32>,
    %568 = vector.extract_strided_slice %557 {offsets = [20, 0], sizes = [4, 4], strides = [1, 1]} : vector<32x4xf32> to vector<4x4xf32>
    %c0_131 = arith.constant 0 : index
    %c20_132 = arith.constant 20 : index
    %569 = vector.load %arg3[%c0_131, %c20_132] : memref<4x32xf32, #tpu.memory_space<vmem>>, vector<4x4xf32>
    tpu.vector_store %arg3[%c0_131, %c20_132], %568 {strides = array<i32>} : memref<4x32xf32, #tpu.memory_space<vmem>>, vector<4x4xf32>,
    %570 = vector.extract_strided_slice %557 {offsets = [24, 0], sizes = [4, 4], strides = [1, 1]} : vector<32x4xf32> to vector<4x4xf32>
    %c0_133 = arith.constant 0 : index
    %c24_134 = arith.constant 24 : index
    %571 = vector.load %arg3[%c0_133, %c24_134] : memref<4x32xf32, #tpu.memory_space<vmem>>, vector<4x4xf32>
    tpu.vector_store %arg3[%c0_133, %c24_134], %570 {strides = array<i32>} : memref<4x32xf32, #tpu.memory_space<vmem>>, vector<4x4xf32>,
    %572 = vector.extract_strided_slice %557 {offsets = [28, 0], sizes = [4, 4], strides = [1, 1]} : vector<32x4xf32> to vector<4x4xf32>
    %c0_135 = arith.constant 0 : index
    %c28_136 = arith.constant 28 : index
    %573 = vector.load %arg3[%c0_135, %c28_136] : memref<4x32xf32, #tpu.memory_space<vmem>>, vector<4x4xf32>
    tpu.vector_store %arg3[%c0_135, %c28_136], %572 {strides = array<i32>} : memref<4x32xf32, #tpu.memory_space<vmem>>, vector<4x4xf32>,
    %c0_137 = arith.constant 0 : index
    %c0_138 = arith.constant 0 : index
    %574 = tpu.strided_load %arg3[%c0_137, %c0_138] {strides = array<i32: 2, 1>} : memref<4x32xf32, #tpu.memory_space<vmem>>, vector<2x32xf32>
    %575 = arith.truncf %574 : vector<2x32xf32> to vector<2x32xbf16>
    %c1_139 = arith.constant 1 : index
    %c0_140 = arith.constant 0 : index
    %576 = tpu.strided_load %arg3[%c1_139, %c0_140] {strides = array<i32: 2, 1>} : memref<4x32xf32, #tpu.memory_space<vmem>>, vector<2x32xf32>
    %577 = arith.truncf %576 : vector<2x32xf32> to vector<2x32xbf16>
    %c128 = arith.constant 128 : index
    %c0_141 = arith.constant 0 : index
    %578 = vector.load %arg1[%c128, %c0_141] : memref<256x96xbf16, #tpu.memory_space<vmem>>, vector<32x32xbf16>
    %c160 = arith.constant 160 : index
    %c0_142 = arith.constant 0 : index
    %579 = vector.load %arg1[%c160, %c0_142] : memref<256x96xbf16, #tpu.memory_space<vmem>>, vector<32x32xbf16>
    %c6 = arith.constant 6 : index
    %c0_143 = arith.constant 0 : index
    %580 = vector.load %arg2[%c6, %c0_143] : memref<11x96xf32, #tpu.memory_space<vmem>>, vector<1x32xf32>
    %cst_144 = arith.constant dense<0.000000e+00> : vector<2x32xf32>
    %581 = tpu.matmul %575, %578, %cst_144 {dimension_numbers = #tpu.dot_dimension_numbers<[1], [0], [0], [1], [0, 0, 1, 1], [], []>} : vector<2x32xbf16>, vector<32x32xbf16>, vector<2x32xf32> -> vector<2x32xf32>
    %cst_145 = arith.constant dense<0.000000e+00> : vector<2x32xf32>
    %582 = tpu.matmul %577, %579, %cst_145 {dimension_numbers = #tpu.dot_dimension_numbers<[1], [0], [0], [1], [0, 0, 1, 1], [], []>} : vector<2x32xbf16>, vector<32x32xbf16>, vector<2x32xf32> -> vector<2x32xf32>
    %583 = arith.addf %581, %582 : vector<2x32xf32>
    %584 = vector.broadcast %580 : vector<1x32xf32> to vector<2x32xf32>
    %585 = arith.addf %583, %584 : vector<2x32xf32>
    %cst_146 = arith.constant dense<0.000000e+00> : vector<32xf32>
    %586 = vector.multi_reduction <add>, %585, %cst_146 [0] : vector<2x32xf32> to vector<32xf32>
    %587 = vector.shape_cast %586 : vector<32xf32> to vector<1x32xf32>
    %cst_147 = arith.constant 2.000000e+00 : f32
    %588 = vector.broadcast %cst_147 : f32 to vector<1x32xf32>
    %589 = arith.divf %587, %588 : vector<1x32xf32>
    %590 = vector.broadcast %589 : vector<1x32xf32> to vector<2x32xf32>
    %591 = arith.subf %585, %590 : vector<2x32xf32>
    %592 = arith.mulf %591, %591 : vector<2x32xf32>
    %cst_148 = arith.constant dense<0.000000e+00> : vector<32xf32>
    %593 = vector.multi_reduction <add>, %592, %cst_148 [0] : vector<2x32xf32> to vector<32xf32>
    %594 = vector.shape_cast %593 : vector<32xf32> to vector<1x32xf32>
    %cst_149 = arith.constant 2.000000e+00 : f32
    %595 = vector.broadcast %cst_149 : f32 to vector<1x32xf32>
    %596 = arith.divf %594, %595 : vector<1x32xf32>
    %c7 = arith.constant 7 : index
    %c0_150 = arith.constant 0 : index
    %597 = vector.load %arg2[%c7, %c0_150] : memref<11x96xf32, #tpu.memory_space<vmem>>, vector<1x32xf32>
    %c8_151 = arith.constant 8 : index
    %c0_152 = arith.constant 0 : index
    %598 = vector.load %arg2[%c8_151, %c0_152] : memref<11x96xf32, #tpu.memory_space<vmem>>, vector<1x32xf32>
    %599 = vector.broadcast %589 : vector<1x32xf32> to vector<2x32xf32>
    %600 = arith.subf %585, %599 : vector<2x32xf32>
    %cst_153 = arith.constant 9.99999974E-6 : f32
    %601 = vector.broadcast %cst_153 : f32 to vector<1x32xf32>
    %602 = arith.addf %596, %601 : vector<1x32xf32>
    %603 = math.rsqrt %602 : vector<1x32xf32>
    %604 = vector.broadcast %603 : vector<1x32xf32> to vector<2x32xf32>
    %605 = arith.mulf %600, %604 : vector<2x32xf32>
    %606 = vector.broadcast %597 : vector<1x32xf32> to vector<2x32xf32>
    %607 = arith.mulf %605, %606 : vector<2x32xf32>
    %608 = vector.broadcast %598 : vector<1x32xf32> to vector<2x32xf32>
    %609 = arith.addf %607, %608 : vector<2x32xf32>
    %610 = math.tanh %609 : vector<2x32xf32>
    %c9 = arith.constant 9 : index
    %c0_154 = arith.constant 0 : index
    %611 = vector.load %arg2[%c9, %c0_154] : memref<11x96xf32, #tpu.memory_space<vmem>>, vector<1x32xf32>
    %c10 = arith.constant 10 : index
    %c0_155 = arith.constant 0 : index
    %612 = vector.load %arg2[%c10, %c0_155] : memref<11x96xf32, #tpu.memory_space<vmem>>, vector<1x1xf32>
    %613 = vector.broadcast %611 : vector<1x32xf32> to vector<2x32xf32>
    %614 = arith.mulf %610, %613 : vector<2x32xf32>
    %cst_156 = arith.constant dense<0.000000e+00> : vector<2xf32>
    %615 = vector.multi_reduction <add>, %614, %cst_156 [1] : vector<2x32xf32> to vector<2xf32>
    %616 = vector.shape_cast %615 : vector<2xf32> to vector<2x1xf32>
    %617 = vector.broadcast %612 : vector<1x1xf32> to vector<2x1xf32>
    %618 = arith.addf %616, %617 : vector<2x1xf32>
    %619 = arith.negf %618 : vector<2x1xf32>
    %620 = math.exp %619 : vector<2x1xf32>
    %cst_157 = arith.constant 1.000000e+00 : f32
    %621 = vector.broadcast %cst_157 : f32 to vector<2x1xf32>
    %622 = arith.addf %621, %620 : vector<2x1xf32>
    %623 = arith.divf %621, %622 : vector<2x1xf32>
    %c0_158 = arith.constant 0 : index
    %c0_159 = arith.constant 0 : index
    %624 = vector.load %arg4[%c0_158, %c0_159] : memref<2x1xf32, #tpu.memory_space<vmem>>, vector<2x1xf32>
    tpu.vector_store %arg4[%c0_158, %c0_159], %623 {strides = array<i32>} : memref<2x1xf32, #tpu.memory_space<vmem>>, vector<2x1xf32>,
    return
  }
}

</mosaic_0001>

<bundles_post_ra>
// kernel: mrscd_forward.1
= control target key start
LH: loop header
LB: loop body
LE: loop exit
PB: predicated region body
PF: predicated region fallthrough
CT: control target
= control target key end

     0   :  { %vm36_vm0 = vcmask 1041408   ;;  %vm29_vm1 = vcmask 31744   ;;  %v2669_v3 = vmov 0.0   ;;  %vm2670_vm2 = vmmov 0   ;;  %s2673_s15 = smov 96   ;;  %s2674_s25 = smov 20   ;;  %s3235_s1 = inlined_call_operand.vmem [shape: bf16[256,96], index: 1, kind: input, shape index: {}]   ;;  %s3236_s0 = inlined_call_operand.vmem [shape: f32[32,4], index: 0, kind: input, shape index: {}]   ;;  %s3237_s2 = inlined_call_operand.vmem [shape: f32[11,96], index: 2, kind: input, shape index: {}]   ;;  %s3238_s3 = inlined_call_operand.vmem [shape: f32[4,32], index: 3, kind: output, shape index: {0}]   ;;  %s3239_s4 = inlined_call_operand.vmem [shape: f32[2,1], index: 4, kind: output, shape index: {1}]  }
   0x1   :  { %v17_v0 = vld [vmem:[%s3235_s1 + $0x78] sm:$0x3]  ;;  %v19_v1 = vld [vmem:[%s3236_s0] sm:$0xff]  ;;  %v20_v2 = vld [vmem:[%s3236_s0 + $0x8] sm:$0xff]  ;;  %2303 = vmatprep.subr.bf16.mxu0 %v2669_v3  ;;  %2307 = vmatprep.mubr.msk.bf16.mxu0 %vm2670_vm2, %v2669_v3  ;;  %v2672_v12 = vmov 0   ;;  %vm89_vm3 = vcmask 785408  }
   0x2   :  { %2521 = vmatprep.subr.msk.bf16.mxu1 %vm36_vm0, %v17_v0  ;;  %v38_v4 = vsel %vm36_vm0, %v17_v0, 0  ;;  %v23_v5 = vpack.c.bf16 %v20_v2, %v19_v1  ;;  %v21_v6 = vld [vmem:[%s3236_s0 + $0x10] sm:$0xff]  ;;  %v22_v7 = vld [vmem:[%s3236_s0 + $0x18] sm:$0xff]  ;;  %v2727_v9 = vld [vmem:[%s3235_s1 + $0x8] sm:$0xff]   ;;  %s2671_s0 = smov 64   ;;  %vm122_vm4 = vcmask 261120  }
   0x3   :  { %2290 = vmatpush3.bf16.msra.mxu1 %v38_v4  ;;  %v24_v8 = vpack.c.bf16 %v22_v7, %v21_v6  ;;  %v2131_v10 = vld [vmem:[%s3237_s2 + $0x2] ss:$0 sm:$0xff]  ;;  %v2125_v13 = vld [vmem:[%s3237_s2] ss:$0 sm:$0xff]  ;;  %v2760_v38 = vld [vmem:[%s3235_s1 + $0x28] sm:$0xff]   ;;  %vm355_vm5 = vcmask 257024  }
   0x4   :  { %2291 = vmatprep.mubr.msk.bf16.mxu1 %vm29_vm1, %v23_v5  ;;  %2295 = vmatprep.subr.bf16.mxu1 %v2669_v3  ;;  %v2737_v11 = vld [vmem:[%s3235_s1] sm:$0xff]   ;;  %v2765_v39 = vld [vmem:[%s3235_s1 + $0x18] sm:$0xff]   ;;  %v2777_v41 = vld [vmem:[%s3235_s1 + $0x10] sm:$0xff]   ;;  %vm1835_vm6 = vcmask 1043456   ;;  %vm1828_vm7 = vcmask 326656   ;;  %vm1888_vm8 = vcmask 27648  }
   0x5   :  { %178 = vrot.lane.b32.xlu0 %v2131_v10, %s2671_s0  ;;  %v2771_v40 = vld [vmem:[%s3235_s1 + $0x20] sm:$0xff]   ;;  %2304 = vmatpush3.bf16.msra.mxu0 %v2765_v39  ;;  %s2675_s26 = smov 16   ;;  %s2676_s7 = smov 4   ;;  %vm1894_vm9 = vcmask 64548   ;;  %vm1900_vm10 = vcmask 93248   ;;  %vm1905_vm11 = vcmask 130148  }
   0x6   :  { %2292 = vmatmul.mubr.msk.bf16.vlgmr.msra.gmra.mxu1 %vm29_vm1, %v24_v8  ;;  %2305 = vmatprep.subr.bf16.mxu0 %v2669_v3  ;;  %v2139_v43 = vld [vmem:[%s3237_s2 + $0x3] ss:$0 sm:$0xff]  ;;  %v2822_v57 = vld [vmem:[%s3237_s2 + $0x1] ss:$0 sm:$0xff]  ;;  %s2678_s8 = smov 12   ;;  %s2680_s9 = smov 28  }
   0x7   :  { %2296 = vmatpush3.bf16.msra.mxu1 %v2727_v9  ;;  %2299 = vmatprep.mubr.msk.bf16.mxu1 %vm2670_vm2, %v2669_v3  ;;  %vm1911_vm12 = vcmask 158848   ;;  %vm1916_vm13 = vcmask 195748   ;;  %vm1922_vm14 = vcmask 224448   ;;  %vm1927_vm15 = vcmask 261348  }
   0x8   :  { %2297 = vmatprep.subr.bf16.mxu1 %v2669_v3  ;;  %vm2058_vm0 = vcmask 254976   ;;  %vm2115_vm1 = vcmask 1024  }
   0x9   :  { %2306 = vmatpush3.bf16.msra.mxu0 %v2777_v41 }
   0xa   :  { %2319 = vmatprep.subr.bf16.mxu0 %v2669_v3 }
   0xb   :  { %2298 = vmatpush3.bf16.msra.mxu1 %v2737_v11 }
   0xc   :  { %2311 = vmatprep.subr.bf16.mxu1 %v2669_v3 }
   0xe   :  { %2300 = vmatmul.mubr.bf16.vlgmr.msra.gmra.mxu1 %v2672_v12 }
   0xf   :  { %2315 = vmatprep.mubr.msk.bf16.mxu1 %vm2670_vm2, %v2669_v3  ;;  %2312 = vmatpush3.bf16.msra.mxu1 %v2760_v38 }
  0x10   :  { %2313 = vmatprep.subr.bf16.mxu1 %v2669_v3 }
  0x13   :  { %2314 = vmatpush3.bf16.msra.mxu1 %v2771_v40 }
  0x14   :  { %2327 = vmatprep.subr.bf16.mxu1 %v2669_v3 }
  0x16   :  { %2316 = vmatmul.mubr.bf16.vlgmr.msra.gmra.mxu1 %v2672_v12 }
  0x17   :  { %2328 = vmatpush3.bf16.msra.mxu1 %v2765_v39  ;;  %2331 = vmatprep.mubr.msk.bf16.mxu1 %vm2670_vm2, %v2669_v3 }
  0x18   :  { %2329 = vmatprep.subr.bf16.mxu1 %v2669_v3 }
  0x1b   :  { %2330 = vmatpush3.bf16.msra.mxu1 %v2777_v41 }
  0x1c   :  { %2343 = vmatprep.subr.bf16.mxu1 %v2669_v3 }
  0x77   :  { %v2752_v21 = vpop.permute.xlu0 %178 }
  0xc6   :  { %v2293_v14 = vpop.f32.mrf.mxu1 }
  0xc7   :  { %v83_v15 = vadd.f32 %v2293_v14, %v2125_v13 }
  0xc8   :  { %v74_v16 = vpop.f32.mrf.mxu1 }
  0xc9   :  { %92 = vst.msk [vmem:[#allocation2 + $0x10] sm:$0xff] %vm89_vm3, %v83_v15  ;;  %v75_v17 = vadd.f32 %v2125_v13, %v74_v16 }
  0xca   :  { %v2294_v18 = vpop.f32.mrf.mxu1 }
  0xcb   :  { %90 = vst.msk [vmem:[#allocation2] sm:$0xff] %vm89_vm3, %v75_v17  ;;  %v86_v19 = vadd.f32 %v2294_v18, %v2125_v13 }
  0xcc   :  { %v77_v20 = vpop.f32.mrf.mxu1 }
  0xcd   :  { %93 = vst.msk [vmem:[#allocation2 + $0x18] sm:$0xff] %vm89_vm3, %v86_v19  ;;  %v78_v22 = vadd.f32 %v2125_v13, %v77_v20 }
  0xce   :  { %v160_v23 = vpop.f32.mrf.mxu1 }
  0xcf   :  { %91 = vst.msk [vmem:[#allocation2 + $0x8] sm:$0xff] %vm89_vm3, %v78_v22  ;;  %v181_v24 = vadd.f32 %v2752_v21, %v160_v23 }
  0xd0   :  { %v2301_v25 = vpop.f32.mrf.mxu1 }
  0xd1   :  { %183 = vrot.lane.b32.xlu0 %v181_v24, %s2671_s0 }
  0xd2   :  { %v163_v26 = vpop.f32.mrf.mxu1  ;;  %v109_v28 = vld [vmem:[#allocation2] sm:$0xf]  ;;  %v357_v14 = vld [vmem:[#allocation2 + $0x4] sm:$0xf] }
  0xd3   :  { %v166_v29 = vadd.f32 %v160_v23, %v109_v28 }
  0xd4   :  { %v2302_v27 = vpop.f32.mrf.mxu1 }
  0xd5   :  { %v2130_v30 = vmul.f32 -1.442695, %v166_v29 }
  0xd6   :  { %v310_v51 = vpop.f32.mrf.mxu1 }
  0xd7   :  { %2550 = vpow2.f32 %v2130_v30 }
  0xd8   :  { %v2317_v53 = vpop.f32.mrf.mxu1 }
  0xda   :  { %v313_v54 = vpop.f32.mrf.mxu1 }
  0xdc   :  { %v2318_v55 = vpop.f32.mrf.mxu1 }
  0xe4   :  { %v2551_v31 = vpop.eup %2550 }
  0xe5   :  { %v170_v32 = vadd.f32 1.0, %v2551_v31 }
  0xe7   :  { %2552 = vrcp.f32 %v170_v32 }
  0xf4   :  { %v2553_v33 = vpop.eup %2552 }
  0xf5   :  { %v193_v44 = vsub.f32 1.0, %v2553_v33  ;;  %v199_v46 = vmul.f32 0.0, %v2553_v33 }
 0x143   :  { %v184_v34 = vpop.permute.xlu0 %183 }
 0x144   :  { %v186_v35 = vmul.f32 %v2553_v33, %v184_v34 }
 0x146   :  { %188 = vrot.lane.b32.xlu1 %v186_v35, %s2671_s0 }
 0x1b8   :  { %v189_v36 = vpop.permute.xlu1 %188 }
 0x1b9   :  { %v191_v37 = vadd.f32 %v189_v36, %v109_v28 }
 0x1bb   :  { %2554 = vtanh.f32 %v191_v37 }
 0x1c8   :  { %v2555_v42 = vpop.eup %2554 }
 0x1c9   :  { %195 = vrot.lane.b32.xlu1 %v2555_v42, %s2673_s15 }
 0x1cd   :  { %328 = vrot.lane.b32.xlu1 %v2139_v43, %s2671_s0 }
 0x23b   :  { %v196_v45 = vpop.permute.xlu1 %195 }
 0x23c   :  { %v198_v47 = vmul.f32 %v196_v45, %v193_v44 }
 0x23e   :  { %v2796_v48 = vadd.f32 %v199_v46, %v198_v47 }
 0x23f   :  { %v2801_v50 = vpop.permute.xlu1 %328 }
 0x240   :  { %v201_v49 = vpack.c.bf16 %v2796_v48, %v2796_v48  ;;  %v331_v52 = vadd.f32 %v2801_v50, %v310_v51 }
 0x242   :  { %207 = vrot.lane.b32.xlu0 %v201_v49, %s2673_s15  ;;  %333 = vrot.lane.b32.xlu1 %v331_v52, %s2671_s0 }
 0x2b4   :  { %v208_v56 = vpop.permute.xlu0 %207  ;;  %v334_v10 = vpop.permute.xlu1 %333 }
 0x2b5   :  { %2308 = vmatmul.mubr.msk.bf16.vlgmr.msra.gmra.mxu0 %vm122_vm4, %v208_v56 }
 0x2b6   :  { %2320 = vmatpush3.bf16.msra.mxu0 %v2727_v9  ;;  %2323 = vmatprep.mubr.msk.bf16.mxu0 %vm2670_vm2, %v2669_v3 }
 0x2b7   :  { %2321 = vmatprep.subr.bf16.mxu0 %v2669_v3 }
 0x2ba   :  { %2322 = vmatpush3.bf16.msra.mxu0 %v2737_v11 }
 0x2bb   :  { %2335 = vmatprep.subr.bf16.mxu0 %v2669_v3 }
 0x2bd   :  { %2324 = vmatmul.mubr.msk.bf16.vlgmr.msra.gmra.mxu0 %vm122_vm4, %v208_v56 }
 0x2be   :  { %2336 = vmatpush3.bf16.msra.mxu0 %v2760_v38  ;;  %2339 = vmatprep.mubr.msk.bf16.mxu0 %vm2670_vm2, %v2669_v3 }
 0x2bf   :  { %2337 = vmatprep.subr.bf16.mxu0 %v2669_v3 }
 0x2c2   :  { %2338 = vmatpush3.bf16.msra.mxu0 %v2771_v40 }
 0x2c3   :  { %2351 = vmatprep.subr.bf16.mxu0 %v2669_v3 }
 0x375   :  { %v258_v58 = vpop.f32.mrf.mxu0 }
 0x376   :  { %v259_v59 = vadd.f32 %v2822_v57, %v258_v58 }
 0x377   :  { %v2309_v60 = vpop.f32.mrf.mxu0 }
 0x378   :  { %v316_v61 = vadd.f32 %v310_v51, %v259_v59 }
 0x379   :  { %v261_v62 = vpop.f32.mrf.mxu0 }
 0x37a   :  { %v2138_v63 = vmul.f32 -1.442695, %v316_v61 }
 0x37b   :  { %v2310_v0 = vpop.f32.mrf.mxu0 }
 0x37c   :  { %2556 = vpow2.f32 %v2138_v63 }
 0x37d   :  { %v392_v1 = vpop.f32.mrf.mxu0 }
 0x37e   :  { %v405_v2 = vadd.f32 %v392_v1, %v2752_v21  ;;  %v398_v15 = vadd.f32 %v392_v1, %v357_v14 }
 0x37f   :  { %v2325_v4 = vpop.f32.mrf.mxu0 }
 0x380   :  { %407 = vrot.lane.b32.xlu0 %v405_v2, %s2671_s0  ;;  %v2141_v16 = vmul.f32 -1.442695, %v398_v15 }
 0x381   :  { %v395_v5 = vpop.f32.mrf.mxu0 }
 0x383   :  { %v2326_v6 = vpop.f32.mrf.mxu0 }
 0x389   :  { %v2557_v7 = vpop.eup %2556 }
 0x38a   :  { %v320_v8 = vadd.f32 1.0, %v2557_v7 }
 0x38c   :  { %2558 = vrcp.f32 %v320_v8  ;;  %v551_v8 = vld [vmem:[#allocation2 + $0x8] sm:$0xf] }
 0x38d   :  { %2560 = vpow2.f32 %v2141_v16 }
 0x399   :  { %v2559_v12 = vpop.eup %2558 }
 0x39a   :  { %v336_v13 = vmul.f32 %v2559_v12, %v334_v10  ;;  %v2561_v17 = vpop.eup %2560  ;;  %v343_v29 = vsub.f32 1.0, %v2559_v12  ;;  %v349_v31 = vmul.f32 0.0, %v2559_v12 }
 0x39b   :  { %v402_v18 = vadd.f32 1.0, %v2561_v17 }
 0x39c   :  { %338 = vrot.lane.b32.xlu1 %v336_v13, %s2671_s0 }
 0x39d   :  { %2562 = vrcp.f32 %v402_v18 }
 0x3aa   :  { %v2563_v19 = vpop.eup %2562 }
 0x3ab   :  { %v417_v35 = vsub.f32 1.0, %v2563_v19  ;;  %v423_v37 = vmul.f32 %v2563_v19, %v2796_v48 }
 0x3f2   :  { %v408_v20 = vpop.permute.xlu0 %407 }
 0x3f3   :  { %v410_v22 = vmul.f32 %v2563_v19, %v408_v20 }
 0x3f5   :  { %412 = vrot.lane.b32.xlu0 %v410_v22, %s2671_s0 }
 0x40e   :  { %v339_v23 = vpop.permute.xlu1 %338 }
 0x40f   :  { %v341_v24 = vadd.f32 %v339_v23, %v259_v59 }
 0x411   :  { %2564 = vtanh.f32 %v341_v24 }
 0x41e   :  { %v2565_v25 = vpop.eup %2564 }
 0x41f   :  { %345 = vrot.lane.b32.xlu1 %v2565_v25, %s2673_s15 }
 0x467   :  { %v413_v26 = vpop.permute.xlu0 %412 }
 0x468   :  { %v415_v27 = vadd.f32 %v413_v26, %v357_v14 }
 0x46a   :  { %2566 = vtanh.f32 %v415_v27 }
 0x477   :  { %v2567_v28 = vpop.eup %2566 }
 0x478   :  { %419 = vrot.lane.b32.xlu0 %v2567_v28, %s2673_s15 }
 0x491   :  { %v346_v30 = vpop.permute.xlu1 %345 }
 0x492   :  { %v348_v32 = vmul.f32 %v346_v30, %v343_v29 }
 0x494   :  { %v2831_v33 = vadd.f32 %v349_v31, %v348_v32 }
 0x496   :  { %v472_v34 = vpack.c.bf16 %v2831_v33, %v2831_v33 }
 0x498   :  { %474 = vrot.lane.b32.xlu1 %v472_v34, %s2673_s15 }
 0x4ea   :  { %v420_v36 = vpop.permute.xlu0 %419 }
 0x4eb   :  { %v422_v42 = vmul.f32 %v420_v36, %v417_v35 }
 0x4ed   :  { %v2837_v43 = vadd.f32 %v423_v37, %v422_v42 }
 0x4ef   :  { %v425_v44 = vpack.c.bf16 %v2837_v43, %v2837_v43 }
 0x4f1   :  { %427 = vrot.lane.b32.xlu0 %v425_v44, %s2673_s15 }
 0x50a   :  { %v475_v45 = vpop.permute.xlu1 %474 }
 0x50b   :  { %2340 = vmatmul.mubr.msk.bf16.vlgmr.msra.gmra.mxu0 %vm122_vm4, %v475_v45 }
 0x50c   :  { %2352 = vmatpush3.bf16.msra.mxu0 %v2765_v39  ;;  %2355 = vmatprep.mubr.msk.bf16.mxu0 %vm2670_vm2, %v2669_v3 }
 0x50d   :  { %2353 = vmatprep.subr.bf16.mxu0 %v2669_v3 }
 0x510   :  { %2354 = vmatpush3.bf16.msra.mxu0 %v2777_v41 }
 0x511   :  { %2367 = vmatprep.subr.bf16.mxu0 %v2669_v3 }
 0x563   :  { %v428_v46 = vpop.permute.xlu0 %427 }
 0x564   :  { %2332 = vmatmul.mubr.msk.bf16.vlgmr.msra.gmra.mxu1 %vm122_vm4, %v428_v46 }
 0x565   :  { %2344 = vmatpush3.bf16.msra.mxu1 %v2727_v9  ;;  %2347 = vmatprep.mubr.msk.bf16.mxu1 %vm2670_vm2, %v2669_v3 }
 0x566   :  { %2345 = vmatprep.subr.bf16.mxu1 %v2669_v3 }
 0x569   :  { %2346 = vmatpush3.bf16.msra.mxu1 %v2737_v11 }
 0x56a   :  { %2359 = vmatprep.subr.bf16.mxu1 %v2669_v3 }
 0x56c   :  { %2348 = vmatmul.mubr.msk.bf16.vlgmr.msra.gmra.mxu1 %vm122_vm4, %v428_v46 }
 0x56d   :  { %2360 = vmatpush3.bf16.msra.mxu1 %v2760_v38  ;;  %2363 = vmatprep.mubr.msk.bf16.mxu1 %vm2670_vm2, %v2669_v3 }
 0x56e   :  { %2361 = vmatprep.subr.bf16.mxu1 %v2669_v3 }
 0x571   :  { %2362 = vmatpush3.bf16.msra.mxu1 %v2771_v40 }
 0x572   :  { %2375 = vmatprep.subr.bf16.mxu1 %v2669_v3 }
 0x5cb   :  { %v513_v47 = vpop.f32.mrf.mxu0 }
 0x5cc   :  { %v526_v48 = vadd.f32 %v513_v47, %v2801_v50 }
 0x5cd   :  { %v2341_v49 = vpop.f32.mrf.mxu0 }
 0x5ce   :  { %528 = vrot.lane.b32.xlu1 %v526_v48, %s2671_s0 }
 0x5cf   :  { %v516_v51 = vpop.f32.mrf.mxu0 }
 0x5d1   :  { %v2342_v52 = vpop.f32.mrf.mxu0 }
 0x624   :  { %v466_v53 = vpop.f32.mrf.mxu1 }
 0x625   :  { %v467_v54 = vadd.f32 %v2822_v57, %v466_v53 }
 0x626   :  { %v2333_v55 = vpop.f32.mrf.mxu1 }
 0x627   :  { %v519_v56 = vadd.f32 %v513_v47, %v467_v54 }
 0x628   :  { %v469_v58 = vpop.f32.mrf.mxu1 }
 0x629   :  { %v2144_v59 = vmul.f32 -1.442695, %v519_v56 }
 0x62a   :  { %v2334_v60 = vpop.f32.mrf.mxu1 }
 0x62b   :  { %2568 = vpow2.f32 %v2144_v59 }
 0x62c   :  { %v586_v61 = vpop.f32.mrf.mxu1 }
 0x62d   :  { %v599_v62 = vadd.f32 %v586_v61, %v2752_v21  ;;  %v592_v10 = vadd.f32 %v586_v61, %v551_v8 }
 0x62e   :  { %v2349_v63 = vpop.f32.mrf.mxu1 }
 0x62f   :  { %601 = vrot.lane.b32.xlu0 %v599_v62, %s2671_s0  ;;  %v2146_v12 = vmul.f32 -1.442695, %v592_v10 }
 0x630   :  { %v589_v0 = vpop.f32.mrf.mxu1 }
 0x632   :  { %v2350_v1 = vpop.f32.mrf.mxu1 }
 0x638   :  { %v2569_v2 = vpop.eup %2568 }
 0x639   :  { %v523_v4 = vadd.f32 1.0, %v2569_v2 }
 0x63b   :  { %2570 = vrcp.f32 %v523_v4 }
 0x63c   :  { %2572 = vpow2.f32 %v2146_v12 }
 0x640   :  { %v529_v6 = vpop.permute.xlu1 %528 }
 0x648   :  { %v2571_v5 = vpop.eup %2570 }
 0x649   :  { %v531_v7 = vmul.f32 %v2571_v5, %v529_v6  ;;  %v2573_v13 = vpop.eup %2572  ;;  %v538_v25 = vsub.f32 1.0, %v2571_v5  ;;  %v544_v27 = vmul.f32 %v2571_v5, %v2831_v33  ;;  %v745_v5 = vld [vmem:[#allocation2 + $0xc] sm:$0xf] }
 0x64a   :  { %v596_v14 = vadd.f32 1.0, %v2573_v13 }
 0x64b   :  { %533 = vrot.lane.b32.xlu1 %v531_v7, %s2671_s0 }
 0x64c   :  { %2574 = vrcp.f32 %v596_v14 }
 0x659   :  { %v2575_v15 = vpop.eup %2574 }
 0x65a   :  { %v611_v31 = vsub.f32 1.0, %v2575_v15  ;;  %v617_v34 = vmul.f32 %v2575_v15, %v2837_v43 }
 0x6a1   :  { %v602_v16 = vpop.permute.xlu0 %601 }
 0x6a2   :  { %v604_v17 = vmul.f32 %v2575_v15, %v602_v16 }
 0x6a4   :  { %606 = vrot.lane.b32.xlu0 %v604_v17, %s2671_s0 }
 0x6bd   :  { %v534_v18 = vpop.permute.xlu1 %533 }
 0x6be   :  { %v536_v19 = vadd.f32 %v534_v18, %v467_v54 }
 0x6c0   :  { %2576 = vtanh.f32 %v536_v19 }
 0x6cd   :  { %v2577_v20 = vpop.eup %2576 }
 0x6ce   :  { %540 = vrot.lane.b32.xlu1 %v2577_v20, %s2673_s15 }
 0x716   :  { %v607_v22 = vpop.permute.xlu0 %606 }
 0x717   :  { %v609_v23 = vadd.f32 %v607_v22, %v551_v8 }
 0x719   :  { %2578 = vtanh.f32 %v609_v23 }
 0x726   :  { %v2579_v24 = vpop.eup %2578 }
 0x727   :  { %613 = vrot.lane.b32.xlu0 %v2579_v24, %s2673_s15 }
 0x740   :  { %v541_v26 = vpop.permute.xlu1 %540 }
 0x741   :  { %v543_v28 = vmul.f32 %v541_v26, %v538_v25 }
 0x743   :  { %v2873_v29 = vadd.f32 %v544_v27, %v543_v28 }
 0x745   :  { %v666_v30 = vpack.c.bf16 %v2873_v29, %v2873_v29 }
 0x747   :  { %668 = vrot.lane.b32.xlu1 %v666_v30, %s2673_s15 }
 0x799   :  { %v614_v32 = vpop.permute.xlu0 %613 }
 0x79a   :  { %v616_v35 = vmul.f32 %v614_v32, %v611_v31 }
 0x79c   :  { %v2879_v36 = vadd.f32 %v617_v34, %v616_v35 }
 0x79e   :  { %v619_v37 = vpack.c.bf16 %v2879_v36, %v2879_v36 }
 0x7a0   :  { %621 = vrot.lane.b32.xlu0 %v619_v37, %s2673_s15 }
 0x7b9   :  { %v669_v42 = vpop.permute.xlu1 %668 }
 0x7ba   :  { %2364 = vmatmul.mubr.msk.bf16.vlgmr.msra.gmra.mxu1 %vm122_vm4, %v669_v42 }
 0x7bb   :  { %2376 = vmatpush3.bf16.msra.mxu1 %v2765_v39  ;;  %2379 = vmatprep.mubr.msk.bf16.mxu1 %vm2670_vm2, %v2669_v3 }
 0x7bc   :  { %2377 = vmatprep.subr.bf16.mxu1 %v2669_v3 }
 0x7bf   :  { %2378 = vmatpush3.bf16.msra.mxu1 %v2777_v41 }
 0x7c0   :  { %2391 = vmatprep.subr.bf16.mxu1 %v2669_v3 }
 0x812   :  { %v622_v43 = vpop.permute.xlu0 %621 }
 0x813   :  { %2356 = vmatmul.mubr.msk.bf16.vlgmr.msra.gmra.mxu0 %vm122_vm4, %v622_v43 }
 0x814   :  { %2368 = vmatpush3.bf16.msra.mxu0 %v2727_v9  ;;  %2371 = vmatprep.mubr.msk.bf16.mxu0 %vm2670_vm2, %v2669_v3 }
 0x815   :  { %2369 = vmatprep.subr.bf16.mxu0 %v2669_v3 }
 0x818   :  { %2370 = vmatpush3.bf16.msra.mxu0 %v2737_v11 }
 0x819   :  { %2383 = vmatprep.subr.bf16.mxu0 %v2669_v3 }
 0x81b   :  { %2372 = vmatmul.mubr.msk.bf16.vlgmr.msra.gmra.mxu0 %vm122_vm4, %v622_v43 }
 0x81c   :  { %2384 = vmatpush3.bf16.msra.mxu0 %v2760_v38  ;;  %2387 = vmatprep.mubr.msk.bf16.mxu0 %vm2670_vm2, %v2669_v3 }
 0x81d   :  { %2385 = vmatprep.subr.bf16.mxu0 %v2669_v3 }
 0x820   :  { %2386 = vmatpush3.bf16.msra.mxu0 %v2771_v40 }
 0x821   :  { %2399 = vmatprep.subr.bf16.mxu0 %v2669_v3 }
 0x87a   :  { %v707_v44 = vpop.f32.mrf.mxu1 }
 0x87b   :  { %v720_v45 = vadd.f32 %v707_v44, %v2801_v50 }
 0x87c   :  { %v2365_v46 = vpop.f32.mrf.mxu1 }
 0x87d   :  { %722 = vrot.lane.b32.xlu1 %v720_v45, %s2671_s0 }
 0x87e   :  { %v710_v47 = vpop.f32.mrf.mxu1 }
 0x880   :  { %v2366_v48 = vpop.f32.mrf.mxu1 }
 0x8d3   :  { %v660_v49 = vpop.f32.mrf.mxu0 }
 0x8d4   :  { %v661_v51 = vadd.f32 %v2822_v57, %v660_v49 }
 0x8d5   :  { %v2357_v52 = vpop.f32.mrf.mxu0 }
 0x8d6   :  { %v713_v53 = vadd.f32 %v707_v44, %v661_v51 }
 0x8d7   :  { %v663_v54 = vpop.f32.mrf.mxu0 }
 0x8d8   :  { %v2149_v55 = vmul.f32 -1.442695, %v713_v53 }
 0x8d9   :  { %v2358_v56 = vpop.f32.mrf.mxu0 }
 0x8da   :  { %2580 = vpow2.f32 %v2149_v55 }
 0x8db   :  { %v780_v58 = vpop.f32.mrf.mxu0 }
 0x8dc   :  { %v793_v59 = vadd.f32 %v780_v58, %v2752_v21  ;;  %v786_v6 = vadd.f32 %v780_v58, %v745_v5 }
 0x8dd   :  { %v2373_v60 = vpop.f32.mrf.mxu0 }
 0x8de   :  { %795 = vrot.lane.b32.xlu0 %v793_v59, %s2671_s0  ;;  %v2151_v7 = vmul.f32 -1.442695, %v786_v6 }
 0x8df   :  { %v783_v61 = vpop.f32.mrf.mxu0 }
 0x8e1   :  { %v2374_v62 = vpop.f32.mrf.mxu0 }
 0x8e7   :  { %v2581_v63 = vpop.eup %2580 }
 0x8e8   :  { %v717_v0 = vadd.f32 1.0, %v2581_v63 }
 0x8ea   :  { %2582 = vrcp.f32 %v717_v0 }
 0x8eb   :  { %2584 = vpow2.f32 %v2151_v7 }
 0x8ef   :  { %v723_v2 = vpop.permute.xlu1 %722 }
 0x8f7   :  { %v2583_v1 = vpop.eup %2582 }
 0x8f8   :  { %v725_v4 = vmul.f32 %v2583_v1, %v723_v2  ;;  %v2585_v8 = vpop.eup %2584  ;;  %v732_v22 = vsub.f32 1.0, %v2583_v1  ;;  %v738_v24 = vmul.f32 %v2583_v1, %v2873_v29  ;;  %v939_v2 = vld [vmem:[#allocation2 + $0x10] sm:$0xf] }
 0x8f9   :  { %v790_v10 = vadd.f32 1.0, %v2585_v8 }
 0x8fa   :  { %727 = vrot.lane.b32.xlu1 %v725_v4, %s2671_s0 }
 0x8fb   :  { %2586 = vrcp.f32 %v790_v10 }
 0x908   :  { %v2587_v12 = vpop.eup %2586 }
 0x909   :  { %v805_v28 = vsub.f32 1.0, %v2587_v12  ;;  %v811_v31 = vmul.f32 %v2587_v12, %v2879_v36 }
 0x950   :  { %v796_v13 = vpop.permute.xlu0 %795 }
 0x951   :  { %v798_v14 = vmul.f32 %v2587_v12, %v796_v13 }
 0x953   :  { %800 = vrot.lane.b32.xlu0 %v798_v14, %s2671_s0 }
 0x96c   :  { %v728_v15 = vpop.permute.xlu1 %727 }
 0x96d   :  { %v730_v16 = vadd.f32 %v728_v15, %v661_v51 }
 0x96f   :  { %2588 = vtanh.f32 %v730_v16 }
 0x97c   :  { %v2589_v17 = vpop.eup %2588 }
 0x97d   :  { %734 = vrot.lane.b32.xlu1 %v2589_v17, %s2673_s15 }
 0x9c5   :  { %v801_v18 = vpop.permute.xlu0 %800 }
 0x9c6   :  { %v803_v19 = vadd.f32 %v801_v18, %v745_v5 }
 0x9c8   :  { %2590 = vtanh.f32 %v803_v19 }
 0x9d5   :  { %v2591_v20 = vpop.eup %2590 }
 0x9d6   :  { %807 = vrot.lane.b32.xlu0 %v2591_v20, %s2673_s15 }
 0x9ef   :  { %v735_v23 = vpop.permute.xlu1 %734 }
 0x9f0   :  { %v737_v25 = vmul.f32 %v735_v23, %v732_v22 }
 0x9f2   :  { %v2915_v26 = vadd.f32 %v738_v24, %v737_v25 }
 0x9f4   :  { %v860_v27 = vpack.c.bf16 %v2915_v26, %v2915_v26 }
 0x9f6   :  { %862 = vrot.lane.b32.xlu1 %v860_v27, %s2673_s15 }
 0xa48   :  { %v808_v30 = vpop.permute.xlu0 %807 }
 0xa49   :  { %v810_v32 = vmul.f32 %v808_v30, %v805_v28 }
 0xa4b   :  { %v2921_v34 = vadd.f32 %v811_v31, %v810_v32 }
 0xa4d   :  { %v813_v35 = vpack.c.bf16 %v2921_v34, %v2921_v34 }
 0xa4f   :  { %815 = vrot.lane.b32.xlu0 %v813_v35, %s2673_s15 }
 0xa68   :  { %v863_v37 = vpop.permute.xlu1 %862 }
 0xa69   :  { %2388 = vmatmul.mubr.msk.bf16.vlgmr.msra.gmra.mxu0 %vm122_vm4, %v863_v37 }
 0xa6a   :  { %2400 = vmatpush3.bf16.msra.mxu0 %v2765_v39  ;;  %2403 = vmatprep.mubr.msk.bf16.mxu0 %vm2670_vm2, %v2669_v3 }
 0xa6b   :  { %2401 = vmatprep.subr.bf16.mxu0 %v2669_v3 }
 0xa6e   :  { %2402 = vmatpush3.bf16.msra.mxu0 %v2777_v41 }
 0xa6f   :  { %2415 = vmatprep.subr.bf16.mxu0 %v2669_v3 }
 0xac1   :  { %v816_v36 = vpop.permute.xlu0 %815 }
 0xac2   :  { %2380 = vmatmul.mubr.msk.bf16.vlgmr.msra.gmra.mxu1 %vm122_vm4, %v816_v36 }
 0xac3   :  { %2392 = vmatpush3.bf16.msra.mxu1 %v2727_v9  ;;  %2395 = vmatprep.mubr.msk.bf16.mxu1 %vm2670_vm2, %v2669_v3 }
 0xac4   :  { %2393 = vmatprep.subr.bf16.mxu1 %v2669_v3 }
 0xac7   :  { %2394 = vmatpush3.bf16.msra.mxu1 %v2737_v11 }
 0xac8   :  { %2407 = vmatprep.subr.bf16.mxu1 %v2669_v3 }
 0xaca   :  { %2396 = vmatmul.mubr.msk.bf16.vlgmr.msra.gmra.mxu1 %vm122_vm4, %v816_v36 }
 0xacb   :  { %2408 = vmatpush3.bf16.msra.mxu1 %v2760_v38  ;;  %2411 = vmatprep.mubr.msk.bf16.mxu1 %vm2670_vm2, %v2669_v3 }
 0xacc   :  { %2409 = vmatprep.subr.bf16.mxu1 %v2669_v3 }
 0xacf   :  { %2410 = vmatpush3.bf16.msra.mxu1 %v2771_v40 }
 0xad0   :  { %2423 = vmatprep.subr.bf16.mxu1 %v2669_v3 }
 0xb29   :  { %v901_v42 = vpop.f32.mrf.mxu0 }
 0xb2a   :  { %v914_v43 = vadd.f32 %v901_v42, %v2801_v50 }
 0xb2b   :  { %v2389_v44 = vpop.f32.mrf.mxu0 }
 0xb2c   :  { %916 = vrot.lane.b32.xlu0 %v914_v43, %s2671_s0 }
 0xb2d   :  { %v904_v45 = vpop.f32.mrf.mxu0 }
 0xb2f   :  { %v2390_v46 = vpop.f32.mrf.mxu0 }
 0xb82   :  { %v854_v47 = vpop.f32.mrf.mxu1 }
 0xb83   :  { %v855_v48 = vadd.f32 %v2822_v57, %v854_v47 }
 0xb84   :  { %v2381_v49 = vpop.f32.mrf.mxu1 }
 0xb85   :  { %v907_v51 = vadd.f32 %v901_v42, %v855_v48 }
 0xb86   :  { %v857_v52 = vpop.f32.mrf.mxu1 }
 0xb87   :  { %v2154_v53 = vmul.f32 -1.442695, %v907_v51 }
 0xb88   :  { %v2382_v54 = vpop.f32.mrf.mxu1 }
 0xb89   :  { %2592 = vpow2.f32 %v2154_v53 }
 0xb8a   :  { %v974_v55 = vpop.f32.mrf.mxu1 }
 0xb8b   :  { %v987_v56 = vadd.f32 %v974_v55, %v2752_v21  ;;  %v980_v4 = vadd.f32 %v974_v55, %v939_v2 }
 0xb8c   :  { %v2397_v58 = vpop.f32.mrf.mxu1 }
 0xb8d   :  { %989 = vrot.lane.b32.xlu1 %v987_v56, %s2671_s0  ;;  %v2156_v5 = vmul.f32 -1.442695, %v980_v4 }
 0xb8e   :  { %v977_v59 = vpop.f32.mrf.mxu1 }
 0xb90   :  { %v2398_v60 = vpop.f32.mrf.mxu1 }
 0xb96   :  { %v2593_v61 = vpop.eup %2592 }
 0xb97   :  { %v911_v62 = vadd.f32 1.0, %v2593_v61 }
 0xb99   :  { %2594 = vrcp.f32 %v911_v62 }
 0xb9a   :  { %2596 = vpow2.f32 %v2156_v5 }
 0xb9e   :  { %v917_v0 = vpop.permute.xlu0 %916 }
 0xba6   :  { %v2595_v63 = vpop.eup %2594 }
 0xba7   :  { %v919_v1 = vmul.f32 %v2595_v63, %v917_v0  ;;  %v2597_v6 = vpop.eup %2596  ;;  %v926_v19 = vsub.f32 1.0, %v2595_v63  ;;  %v932_v22 = vmul.f32 %v2595_v63, %v2915_v26  ;;  %v1133_v63 = vld [vmem:[#allocation2 + $0x14] sm:$0xf] }
 0xba8   :  { %v984_v7 = vadd.f32 1.0, %v2597_v6 }
 0xba9   :  { %921 = vrot.lane.b32.xlu0 %v919_v1, %s2671_s0 }
 0xbaa   :  { %2598 = vrcp.f32 %v984_v7 }
 0xbb7   :  { %v2599_v8 = vpop.eup %2598 }
 0xbb8   :  { %v999_v27 = vsub.f32 1.0, %v2599_v8  ;;  %v1005_v30 = vmul.f32 %v2599_v8, %v2921_v34 }
 0xbff   :  { %v990_v10 = vpop.permute.xlu1 %989 }
 0xc00   :  { %v992_v12 = vmul.f32 %v2599_v8, %v990_v10 }
 0xc02   :  { %994 = vrot.lane.b32.xlu1 %v992_v12, %s2671_s0 }
 0xc1b   :  { %v922_v13 = vpop.permute.xlu0 %921 }
 0xc1c   :  { %v924_v14 = vadd.f32 %v922_v13, %v855_v48 }
 0xc1e   :  { %2600 = vtanh.f32 %v924_v14 }
 0xc2b   :  { %v2601_v15 = vpop.eup %2600 }
 0xc2c   :  { %928 = vrot.lane.b32.xlu0 %v2601_v15, %s2673_s15 }
 0xc74   :  { %v995_v16 = vpop.permute.xlu1 %994 }
 0xc75   :  { %v997_v17 = vadd.f32 %v995_v16, %v939_v2 }
 0xc77   :  { %2602 = vtanh.f32 %v997_v17 }
 0xc84   :  { %v2603_v18 = vpop.eup %2602 }
 0xc85   :  { %1001 = vrot.lane.b32.xlu1 %v2603_v18, %s2673_s15 }
 0xc9e   :  { %v929_v20 = vpop.permute.xlu0 %928 }
 0xc9f   :  { %v931_v23 = vmul.f32 %v929_v20, %v926_v19 }
 0xca1   :  { %v2957_v24 = vadd.f32 %v932_v22, %v931_v23 }
 0xca3   :  { %v1054_v25 = vpack.c.bf16 %v2957_v24, %v2957_v24 }
 0xca5   :  { %1056 = vrot.lane.b32.xlu1 %v1054_v25, %s2673_s15 }
 0xcf7   :  { %v1002_v28 = vpop.permute.xlu1 %1001 }
 0xcf8   :  { %v1004_v31 = vmul.f32 %v1002_v28, %v999_v27 }
 0xcfa   :  { %v2963_v32 = vadd.f32 %v1005_v30, %v1004_v31 }
 0xcfc   :  { %v1007_v35 = vpack.c.bf16 %v2963_v32, %v2963_v32 }
 0xcfe   :  { %1009 = vrot.lane.b32.xlu0 %v1007_v35, %s2673_s15 }
 0xd17   :  { %v1057_v37 = vpop.permute.xlu1 %1056 }
 0xd18   :  { %2412 = vmatmul.mubr.msk.bf16.vlgmr.msra.gmra.mxu1 %vm122_vm4, %v1057_v37  ;;  %v3021_v37 = vld [vmem:[%s3235_s1 + $0x8] sm:$0xff]  }
 0xd19   :  { %2424 = vmatpush3.bf16.msra.mxu1 %v2765_v39  ;;  %2427 = vmatprep.mubr.msk.bf16.mxu1 %vm2670_vm2, %v2669_v3 }
 0xd1a   :  { %2425 = vmatprep.subr.bf16.mxu1 %v2669_v3 }
 0xd1d   :  { %2426 = vmatpush3.bf16.msra.mxu1 %v2777_v41 }
 0xd1e   :  { %2439 = vmatprep.subr.bf16.mxu1 %v2669_v3 }
 0xd70   :  { %v1010_v34 = vpop.permute.xlu0 %1009 }
 0xd71   :  { %2404 = vmatmul.mubr.msk.bf16.vlgmr.msra.gmra.mxu0 %vm122_vm4, %v1010_v34 }
 0xd72   :  { %2416 = vmatpush3.bf16.msra.mxu0 %v2727_v9  ;;  %2419 = vmatprep.mubr.msk.bf16.mxu0 %vm2670_vm2, %v2669_v3 }
 0xd73   :  { %2417 = vmatprep.subr.bf16.mxu0 %v2669_v3 }
 0xd76   :  { %2418 = vmatpush3.bf16.msra.mxu0 %v2737_v11 }
 0xd77   :  { %2431 = vmatprep.subr.bf16.mxu0 %v2669_v3 }
 0xd79   :  { %2420 = vmatmul.mubr.msk.bf16.vlgmr.msra.gmra.mxu0 %vm122_vm4, %v1010_v34 }
 0xd7a   :  { %2432 = vmatpush3.bf16.msra.mxu0 %v2760_v38  ;;  %2435 = vmatprep.mubr.msk.bf16.mxu0 %vm2670_vm2, %v2669_v3 }
 0xd7b   :  { %2433 = vmatprep.subr.bf16.mxu0 %v2669_v3 }
 0xd7e   :  { %2434 = vmatpush3.bf16.msra.mxu0 %v2771_v40 }
 0xd7f   :  { %2447 = vmatprep.subr.bf16.mxu0 %v2669_v3 }
 0xdd8   :  { %v1095_v9 = vpop.f32.mrf.mxu1 }
 0xdd9   :  { %v1108_v36 = vadd.f32 %v1095_v9, %v2801_v50 }
 0xdda   :  { %v2413_v42 = vpop.f32.mrf.mxu1 }
 0xddb   :  { %1110 = vrot.lane.b32.xlu0 %v1108_v36, %s2671_s0 }
 0xddc   :  { %v1098_v11 = vpop.f32.mrf.mxu1 }
 0xdde   :  { %v2414_v43 = vpop.f32.mrf.mxu1 }
 0xe31   :  { %v1048_v44 = vpop.f32.mrf.mxu0 }
 0xe32   :  { %v1049_v45 = vadd.f32 %v2822_v57, %v1048_v44 }
 0xe33   :  { %v2405_v46 = vpop.f32.mrf.mxu0 }
 0xe34   :  { %v1101_v47 = vadd.f32 %v1095_v9, %v1049_v45 }
 0xe35   :  { %v1051_v48 = vpop.f32.mrf.mxu0 }
 0xe36   :  { %v2159_v49 = vmul.f32 -1.442695, %v1101_v47 }
 0xe37   :  { %v2406_v51 = vpop.f32.mrf.mxu0 }
 0xe38   :  { %2604 = vpow2.f32 %v2159_v49 }
 0xe39   :  { %v1168_v52 = vpop.f32.mrf.mxu0 }
 0xe3a   :  { %v1181_v53 = vadd.f32 %v1168_v52, %v2752_v21  ;;  %v1174_v0 = vadd.f32 %v1168_v52, %v1133_v63 }
 0xe3b   :  { %v2421_v54 = vpop.f32.mrf.mxu0 }
 0xe3c   :  { %1183 = vrot.lane.b32.xlu1 %v1181_v53, %s2671_s0  ;;  %v2161_v1 = vmul.f32 -1.442695, %v1174_v0 }
 0xe3d   :  { %v1171_v55 = vpop.f32.mrf.mxu0 }
 0xe3f   :  { %v2422_v56 = vpop.f32.mrf.mxu0 }
 0xe45   :  { %v2605_v58 = vpop.eup %2604 }
 0xe46   :  { %v1105_v59 = vadd.f32 1.0, %v2605_v58 }
 0xe48   :  { %2606 = vrcp.f32 %v1105_v59  ;;  %v1327_v59 = vld [vmem:[#allocation2 + $0x18] sm:$0xf] }
 0xe49   :  { %2608 = vpow2.f32 %v2161_v1 }
 0xe4d   :  { %v1111_v61 = vpop.permute.xlu0 %1110 }
 0xe55   :  { %v2607_v60 = vpop.eup %2606 }
 0xe56   :  { %v1113_v62 = vmul.f32 %v2607_v60, %v1111_v61  ;;  %v2609_v2 = vpop.eup %2608  ;;  %v1120_v16 = vsub.f32 1.0, %v2607_v60  ;;  %v1126_v18 = vmul.f32 %v2607_v60, %v2957_v24 }
 0xe57   :  { %v1178_v4 = vadd.f32 1.0, %v2609_v2 }
 0xe58   :  { %1115 = vrot.lane.b32.xlu0 %v1113_v62, %s2671_s0 }
 0xe59   :  { %2610 = vrcp.f32 %v1178_v4 }
 0xe66   :  { %v2611_v5 = vpop.eup %2610 }
 0xe67   :  { %v1193_v23 = vsub.f32 1.0, %v2611_v5  ;;  %v1199_v27 = vmul.f32 %v2611_v5, %v2963_v32 }
 0xeae   :  { %v1184_v6 = vpop.permute.xlu1 %1183 }
 0xeaf   :  { %v1186_v7 = vmul.f32 %v2611_v5, %v1184_v6 }
 0xeb1   :  { %1188 = vrot.lane.b32.xlu1 %v1186_v7, %s2671_s0 }
 0xeca   :  { %v1116_v8 = vpop.permute.xlu0 %1115 }
 0xecb   :  { %v1118_v10 = vadd.f32 %v1116_v8, %v1049_v45 }
 0xecd   :  { %2612 = vtanh.f32 %v1118_v10 }
 0xeda   :  { %v2613_v12 = vpop.eup %2612 }
 0xedb   :  { %1122 = vrot.lane.b32.xlu0 %v2613_v12, %s2673_s15 }
 0xf23   :  { %v1189_v13 = vpop.permute.xlu1 %1188 }
 0xf24   :  { %v1191_v14 = vadd.f32 %v1189_v13, %v1133_v63 }
 0xf26   :  { %2614 = vtanh.f32 %v1191_v14 }
 0xf33   :  { %v2615_v15 = vpop.eup %2614 }
 0xf34   :  { %1195 = vrot.lane.b32.xlu1 %v2615_v15, %s2673_s15 }
 0xf4d   :  { %v1123_v17 = vpop.permute.xlu0 %1122 }
 0xf4e   :  { %v1125_v19 = vmul.f32 %v1123_v17, %v1120_v16 }
 0xf50   :  { %v2999_v20 = vadd.f32 %v1126_v18, %v1125_v19 }
 0xf52   :  { %v1248_v22 = vpack.c.bf16 %v2999_v20, %v2999_v20 }
 0xf54   :  { %1250 = vrot.lane.b32.xlu0 %v1248_v22, %s2673_s15 }
 0xfa6   :  { %v1196_v25 = vpop.permute.xlu1 %1195 }
 0xfa7   :  { %v1198_v28 = vmul.f32 %v1196_v25, %v1193_v23 }
 0xfa9   :  { %v3005_v30 = vadd.f32 %v1199_v27, %v1198_v28 }
 0xfab   :  { %v1201_v31 = vpack.c.bf16 %v3005_v30, %v3005_v30 }
 0xfad   :  { %1203 = vrot.lane.b32.xlu1 %v1201_v31, %s2673_s15  ;;  %v2664_v31 = vld [vmem:[%s3235_s1 + $0x18] sm:$0xff]  }
 0xfc6   :  { %v1251_v35 = vpop.permute.xlu0 %1250 }
 0xfc7   :  { %2436 = vmatmul.mubr.msk.bf16.vlgmr.msra.gmra.mxu0 %vm122_vm4, %v1251_v35 }
 0xfc8   :  { %2448 = vmatpush3.bf16.msra.mxu0 %v2765_v39  ;;  %2451 = vmatprep.mubr.msk.bf16.mxu0 %vm2670_vm2, %v2669_v3  ;;  %v3030_v39 = vld [vmem:[%s3235_s1] sm:$0xff]  }
 0xfc9   :  { %2449 = vmatprep.subr.bf16.mxu0 %v2669_v3 }
 0xfcc   :  { %2450 = vmatpush3.bf16.msra.mxu0 %v2777_v41 }
 0xfcd   :  { %2463 = vmatprep.subr.bf16.mxu0 %v2669_v3 }
0x101f   :  { %v1204_v32 = vpop.permute.xlu1 %1203 }
0x1020   :  { %2428 = vmatmul.mubr.msk.bf16.vlgmr.msra.gmra.mxu1 %vm122_vm4, %v1204_v32 }
0x1021   :  { %2440 = vmatpush3.bf16.msra.mxu1 %v3021_v37  ;;  %2443 = vmatprep.mubr.msk.bf16.mxu1 %vm2670_vm2, %v2669_v3 }
0x1022   :  { %2441 = vmatprep.subr.bf16.mxu1 %v2669_v3 }
0x1025   :  { %2442 = vmatpush3.bf16.msra.mxu1 %v3030_v39 }
0x1026   :  { %2455 = vmatprep.subr.bf16.mxu1 %v2669_v3 }
0x1028   :  { %2444 = vmatmul.mubr.msk.bf16.vlgmr.msra.gmra.mxu1 %vm122_vm4, %v1204_v32  ;;  %v2666_v32 = vld [vmem:[%s3235_s1 + $0x28] sm:$0xff]  }
0x1029   :  { %2456 = vmatpush3.bf16.msra.mxu1 %v2760_v38  ;;  %2459 = vmatprep.mubr.msk.bf16.mxu1 %vm2670_vm2, %v2669_v3 }
0x102a   :  { %2457 = vmatprep.subr.bf16.mxu1 %v2669_v3 }
0x102d   :  { %2458 = vmatpush3.bf16.msra.mxu1 %v2771_v40 }
0x102e   :  { %2471 = vmatprep.subr.bf16.mxu1 %v2669_v3 }
0x1087   :  { %v1289_v41 = vpop.f32.mrf.mxu0 }
0x1088   :  { %v1302_v34 = vadd.f32 %v1289_v41, %v2801_v50 }
0x1089   :  { %v2437_v9 = vpop.f32.mrf.mxu0 }
0x108a   :  { %1304 = vrot.lane.b32.xlu0 %v1302_v34, %s2671_s0 }
0x108b   :  { %v1292_v36 = vpop.f32.mrf.mxu0 }
0x108d   :  { %v2438_v42 = vpop.f32.mrf.mxu0 }
0x10e0   :  { %v1242_v11 = vpop.f32.mrf.mxu1 }
0x10e1   :  { %v1243_v38 = vadd.f32 %v2822_v57, %v1242_v11 }
0x10e2   :  { %v2429_v43 = vpop.f32.mrf.mxu1 }
0x10e3   :  { %v1295_v44 = vadd.f32 %v1289_v41, %v1243_v38 }
0x10e4   :  { %v1245_v45 = vpop.f32.mrf.mxu1 }
0x10e5   :  { %v2164_v46 = vmul.f32 -1.442695, %v1295_v44 }
0x10e6   :  { %v2430_v47 = vpop.f32.mrf.mxu1 }
0x10e7   :  { %2616 = vpow2.f32 %v2164_v46 }
0x10e8   :  { %v1362_v40 = vpop.f32.mrf.mxu1 }
0x10e9   :  { %v1375_v48 = vadd.f32 %v1362_v40, %v2752_v21  ;;  %v1368_v60 = vadd.f32 %v1362_v40, %v1327_v59 }
0x10ea   :  { %v2445_v49 = vpop.f32.mrf.mxu1 }
0x10eb   :  { %1377 = vrot.lane.b32.xlu1 %v1375_v48, %s2671_s0  ;;  %v2166_v61 = vmul.f32 -1.442695, %v1368_v60 }
0x10ec   :  { %v1365_v51 = vpop.f32.mrf.mxu1 }
0x10ee   :  { %v2446_v52 = vpop.f32.mrf.mxu1 }
0x10f4   :  { %v2617_v53 = vpop.eup %2616 }
0x10f5   :  { %v1299_v54 = vadd.f32 1.0, %v2617_v53 }
0x10f7   :  { %2618 = vrcp.f32 %v1299_v54 }
0x10f8   :  { %2620 = vpow2.f32 %v2166_v61 }
0x10fc   :  { %v1305_v56 = vpop.permute.xlu0 %1304 }
0x1104   :  { %v2619_v55 = vpop.eup %2618 }
0x1105   :  { %v1307_v58 = vmul.f32 %v2619_v55, %v1305_v56  ;;  %v2621_v62 = vpop.eup %2620  ;;  %v1314_v12 = vsub.f32 1.0, %v2619_v55  ;;  %v1320_v14 = vmul.f32 %v2619_v55, %v2999_v20  ;;  %v1521_v56 = vld [vmem:[#allocation2 + $0x1c] sm:$0xf] }
0x1106   :  { %v1372_v63 = vadd.f32 1.0, %v2621_v62 }
0x1107   :  { %1309 = vrot.lane.b32.xlu0 %v1307_v58, %s2671_s0 }
0x1108   :  { %2622 = vrcp.f32 %v1372_v63 }
0x1115   :  { %v2623_v0 = vpop.eup %2622 }
0x1116   :  { %v1387_v18 = vsub.f32 1.0, %v2623_v0  ;;  %v1393_v22 = vmul.f32 %v2623_v0, %v3005_v30  ;;  %v2665_v30 = vld [vmem:[%s3235_s1 + $0x10] sm:$0xff]  }
0x115d   :  { %v1378_v1 = vpop.permute.xlu1 %1377 }
0x115e   :  { %v1380_v2 = vmul.f32 %v2623_v0, %v1378_v1 }
0x1160   :  { %1382 = vrot.lane.b32.xlu1 %v1380_v2, %s2671_s0 }
0x1179   :  { %v1310_v4 = vpop.permute.xlu0 %1309 }
0x117a   :  { %v1312_v5 = vadd.f32 %v1310_v4, %v1243_v38 }
0x117c   :  { %2624 = vtanh.f32 %v1312_v5 }
0x1189   :  { %v2625_v6 = vpop.eup %2624 }
0x118a   :  { %1316 = vrot.lane.b32.xlu0 %v2625_v6, %s2673_s15 }
0x11d2   :  { %v1383_v7 = vpop.permute.xlu1 %1382 }
0x11d3   :  { %v1385_v8 = vadd.f32 %v1383_v7, %v1327_v59 }
0x11d5   :  { %2626 = vtanh.f32 %v1385_v8 }
0x11e2   :  { %v2627_v10 = vpop.eup %2626 }
0x11e3   :  { %1389 = vrot.lane.b32.xlu1 %v2627_v10, %s2673_s15 }
0x11fc   :  { %v1317_v13 = vpop.permute.xlu0 %1316 }
0x11fd   :  { %v1319_v15 = vmul.f32 %v1317_v13, %v1314_v12 }
0x11ff   :  { %v3051_v16 = vadd.f32 %v1320_v14, %v1319_v15 }
0x1201   :  { %v1442_v17 = vpack.c.bf16 %v3051_v16, %v3051_v16 }
0x1203   :  { %1444 = vrot.lane.b32.xlu0 %v1442_v17, %s2673_s15 }
0x1255   :  { %v1390_v19 = vpop.permute.xlu1 %1389 }
0x1256   :  { %v1392_v23 = vmul.f32 %v1390_v19, %v1387_v18 }
0x1258   :  { %v3057_v25 = vadd.f32 %v1393_v22, %v1392_v23 }
0x125a   :  { %v1395_v27 = vpack.c.bf16 %v3057_v25, %v3057_v25 }
0x125c   :  { %1397 = vrot.lane.b32.xlu1 %v1395_v27, %s2673_s15 }
0x1275   :  { %v1445_v28 = vpop.permute.xlu0 %1444 }
0x1276   :  { %2460 = vmatmul.mubr.msk.bf16.vlgmr.msra.gmra.mxu1 %vm122_vm4, %v1445_v28 }
0x1277   :  { %2472 = vmatpush3.bf16.msra.mxu1 %v2664_v31  ;;  %2475 = vmatprep.mubr.msk.bf16.mxu1 %vm2670_vm2, %v2669_v3 }
0x1278   :  { %2473 = vmatprep.subr.bf16.mxu1 %v2669_v3 }
0x127b   :  { %2474 = vmatpush3.bf16.msra.mxu1 %v2665_v30 }
0x12ce   :  { %v1398_v35 = vpop.permute.xlu1 %1397 }
0x12cf   :  { %2452 = vmatmul.mubr.msk.bf16.vlgmr.msra.gmra.mxu0 %vm122_vm4, %v1398_v35 }
0x12d0   :  { %2464 = vmatpush3.bf16.msra.mxu0 %v3021_v37  ;;  %2467 = vmatprep.mubr.msk.bf16.mxu0 %vm2670_vm2, %v2669_v3  ;;  %v2667_v37 = vld [vmem:[%s3235_s1 + $0x20] sm:$0xff]  }
0x12d1   :  { %2465 = vmatprep.subr.bf16.mxu0 %v2669_v3 }
0x12d4   :  { %2466 = vmatpush3.bf16.msra.mxu0 %v3030_v39 }
0x12d5   :  { %2479 = vmatprep.subr.bf16.mxu0 %v2669_v3 }
0x12d7   :  { %2468 = vmatmul.mubr.msk.bf16.vlgmr.msra.gmra.mxu0 %vm122_vm4, %v1398_v35 }
0x12d8   :  { %2480 = vmatpush3.bf16.msra.mxu0 %v2666_v32  ;;  %2483 = vmatprep.mubr.msk.bf16.mxu0 %vm2670_vm2, %v2669_v3 }
0x12d9   :  { %2481 = vmatprep.subr.bf16.mxu0 %v2669_v3 }
0x12dc   :  { %2482 = vmatpush3.bf16.msra.mxu0 %v2667_v37 }
0x1336   :  { %v1483_v39 = vpop.f32.mrf.mxu1 }
0x1337   :  { %v1496_v41 = vadd.f32 %v1483_v39, %v2801_v50 }
0x1338   :  { %v2461_v34 = vpop.f32.mrf.mxu1 }
0x1339   :  { %1498 = vrot.lane.b32.xlu0 %v1496_v41, %s2671_s0 }
0x133a   :  { %v1486_v9 = vpop.f32.mrf.mxu1 }
0x133c   :  { %v2462_v36 = vpop.f32.mrf.mxu1 }
0x138f   :  { %v1436_v42 = vpop.f32.mrf.mxu0 }
0x1390   :  { %v1437_v11 = vadd.f32 %v2822_v57, %v1436_v42 }
0x1391   :  { %v2453_v38 = vpop.f32.mrf.mxu0 }
0x1392   :  { %v1489_v43 = vadd.f32 %v1483_v39, %v1437_v11  ;;  %v2668_v39 = vld [vmem:[%s3237_s2 + $0x1] ss:$0 sm:$0xff] }
0x1393   :  { %v1439_v44 = vpop.f32.mrf.mxu0 }
0x1394   :  { %v2169_v45 = vmul.f32 -1.442695, %v1489_v43 }
0x1395   :  { %v2454_v46 = vpop.f32.mrf.mxu0 }
0x1396   :  { %2628 = vpow2.f32 %v2169_v45 }
0x1397   :  { %v1556_v47 = vpop.f32.mrf.mxu0 }
0x1398   :  { %v1569_v40 = vadd.f32 %v1556_v47, %v2752_v21  ;;  %v1562_v58 = vadd.f32 %v1556_v47, %v1521_v56 }
0x1399   :  { %v2469_v48 = vpop.f32.mrf.mxu0 }
0x139a   :  { %1571 = vrot.lane.b32.xlu1 %v1569_v40, %s2671_s0  ;;  %v2171_v59 = vmul.f32 -1.442695, %v1562_v58 }
0x139b   :  { %v1559_v49 = vpop.f32.mrf.mxu0 }
0x139d   :  { %v2470_v51 = vpop.f32.mrf.mxu0 }
0x139e   :  { %v2542_v51 = vld [vmem:[%s3235_s1 + $0x30] sm:$0xff]  }
0x13a3   :  { %v2629_v52 = vpop.eup %2628 }
0x13a4   :  { %v1493_v53 = vadd.f32 1.0, %v2629_v52 }
0x13a6   :  { %2630 = vrcp.f32 %v1493_v53 }
0x13a7   :  { %2632 = vpow2.f32 %v2171_v59 }
0x13ab   :  { %v1499_v55 = vpop.permute.xlu0 %1498 }
0x13b3   :  { %v2631_v54 = vpop.eup %2630 }
0x13b4   :  { %v1501_v57 = vmul.f32 %v2631_v54, %v1499_v55  ;;  %v2633_v60 = vpop.eup %2632  ;;  %v1508_v7 = vsub.f32 1.0, %v2631_v54  ;;  %v1514_v10 = vmul.f32 %v2631_v54, %v3051_v16 }
0x13b5   :  { %v1566_v61 = vadd.f32 1.0, %v2633_v60 }
0x13b6   :  { %1503 = vrot.lane.b32.xlu0 %v1501_v57, %s2671_s0 }
0x13b7   :  { %2634 = vrcp.f32 %v1566_v61 }
0x13c4   :  { %v2635_v21 = vpop.eup %2634 }
0x13c5   :  { %v1581_v15 = vsub.f32 1.0, %v2635_v21  ;;  %v1587_v18 = vmul.f32 %v2635_v21, %v3057_v25 }
0x140c   :  { %v1572_v62 = vpop.permute.xlu1 %1571 }
0x140d   :  { %v1574_v63 = vmul.f32 %v2635_v21, %v1572_v62 }
0x140f   :  { %1576 = vrot.lane.b32.xlu1 %v1574_v63, %s2671_s0  ;;  %v2543_v63 = vld [vmem:[%s3235_s1 + $0x70] ss:$0 sps:$4 sm:$0xff]  }
0x1410   :  { %2522 = vmatprep.subr.msk.bf16.mxu0 %vm1835_vm6, %v2543_v63 }
0x1428   :  { %v1504_v0 = vpop.permute.xlu0 %1503 }
0x1429   :  { %v1506_v1 = vadd.f32 %v1504_v0, %v1437_v11  ;;  %v2544_v0 = vld [vmem:[%s3235_s1 + $0x68] sm:$0xff]  }
0x142b   :  { %2636 = vtanh.f32 %v1506_v1  ;;  %v1837_v1 = vsel %vm1835_vm6, %v2543_v63, 0 }
0x1438   :  { %v2637_v2 = vpop.eup %2636 }
0x1439   :  { %1510 = vrot.lane.b32.xlu0 %v2637_v2, %s2673_s15  ;;  %v2545_v2 = vld [vmem:[%s3235_s1 + $0x60] sm:$0xff]  }
0x1481   :  { %v1577_v4 = vpop.permute.xlu1 %1576 }
0x1482   :  { %v1579_v5 = vadd.f32 %v1577_v4, %v1521_v56 }
0x1484   :  { %2638 = vtanh.f32 %v1579_v5  ;;  %v2175_v5 = vld [vmem:[%s3237_s2 + $0x4] ss:$0 sm:$0xff] }
0x1491   :  { %v2639_v6 = vpop.eup %2638 }
0x1492   :  { %1583 = vrot.lane.b32.xlu1 %v2639_v6, %s2673_s15 }
0x14ab   :  { %v1511_v8 = vpop.permute.xlu0 %1510 }
0x14ac   :  { %v1513_v12 = vmul.f32 %v1511_v8, %v1508_v7 }
0x14ae   :  { %v3099_v13 = vadd.f32 %v1514_v10, %v1513_v12 }
0x14b0   :  { %v1636_v14 = vpack.c.bf16 %v3099_v13, %v3099_v13 }
0x14b2   :  { %1638 = vrot.lane.b32.xlu0 %v1636_v14, %s2673_s15 }
0x1504   :  { %v1584_v17 = vpop.permute.xlu1 %1583 }
0x1505   :  { %v1586_v19 = vmul.f32 %v1584_v17, %v1581_v15 }
0x1507   :  { %v1588_v22 = vadd.f32 %v1587_v18, %v1586_v19 }
0x1509   :  { %v1589_v23 = vpack.c.bf16 %v1588_v22, %v1588_v22 }
0x150b   :  { %1591 = vrot.lane.b32.xlu1 %v1589_v23, %s2673_s15 }
0x1524   :  { %v1639_v27 = vpop.permute.xlu0 %1638 }
0x1525   :  { %2484 = vmatmul.mubr.msk.bf16.vlgmr.msra.gmra.mxu0 %vm122_vm4, %v1639_v27  ;;  %v2180_v27 = vld [vmem:[%s3237_s2 + $0x5] ss:$0 sm:$0xff] }
0x1526   :  { %2496 = vmatpush3.bf16.msra.mxu0 %v1837_v1 }
0x1527   :  { %2497 = vmatprep.subr.bf16.mxu0 %v2544_v0 }
0x152a   :  { %2498 = vmatpush3.bf16.msra.mxu0 %v2544_v0 }
0x152b   :  { %2499 = vmatprep.subr.bf16.mxu0 %v2545_v2 }
0x152e   :  { %2500 = vmatpush3.bf16.msra.mxu0 %v2545_v2 }
0x152f   :  { %2513 = vmatprep.subr.bf16.mxu0 %v2669_v3 }
0x157d   :  { %v1592_v28 = vpop.permute.xlu1 %1591 }
0x157e   :  { %2476 = vmatmul.mubr.msk.bf16.vlgmr.msra.gmra.mxu1 %vm122_vm4, %v1592_v28 }
0x15e5   :  { %v1677_v31 = vpop.f32.mrf.mxu0 }
0x15e6   :  { %v1690_v30 = vadd.f32 %v1677_v31, %v2801_v50 }
0x15e7   :  { %v2485_v35 = vpop.f32.mrf.mxu0 }
0x15e8   :  { %1692 = vrot.lane.b32.xlu0 %v1690_v30, %s2671_s0  ;;  %v2546_v35 = vld [vmem:[%s3235_s1 + $0x58] sm:$0xff]  }
0x15e9   :  { %v1680_v32 = vpop.f32.mrf.mxu0 }
0x15ea   :  { %v2547_v32 = vld [vmem:[%s3235_s1 + $0x48] sm:$0xff]  }
0x15eb   :  { %v2486_v37 = vpop.f32.mrf.mxu0 }
0x163e   :  { %v1630_v25 = vpop.f32.mrf.mxu1 }
0x163f   :  { %v1631_v41 = vadd.f32 %v2668_v39, %v1630_v25  ;;  %v2548_v39 = vld [vmem:[%s3235_s1 + $0x50] sm:$0xff]  }
0x1640   :  { %v2477_v34 = vpop.f32.mrf.mxu1 }
0x1641   :  { %v1683_v9 = vadd.f32 %v1677_v31, %v1631_v41 }
0x1642   :  { %v1633_v36 = vpop.f32.mrf.mxu1 }
0x1643   :  { %v2174_v42 = vmul.f32 -1.442695, %v1683_v9 }
0x1644   :  { %v2478_v11 = vpop.f32.mrf.mxu1 }
0x1645   :  { %2640 = vpow2.f32 %v2174_v42 }
0x1652   :  { %v2641_v38 = vpop.eup %2640 }
0x1653   :  { %v1687_v43 = vadd.f32 1.0, %v2641_v38 }
0x1655   :  { %2642 = vrcp.f32 %v1687_v43 }
0x165a   :  { %v1693_v44 = vpop.permute.xlu0 %1692 }
0x1662   :  { %v2643_v50 = vpop.eup %2642 }
0x1663   :  { %v1695_v45 = vmul.f32 %v2643_v50, %v1693_v44  ;;  %v1702_v52 = vsub.f32 1.0, %v2643_v50 }
0x1665   :  { %1697 = vrot.lane.b32.xlu1 %v1695_v45, %s2671_s0  ;;  %s2677_s0 = smov 8  }
0x1669   :  { %352 = vrot.lane.b32.xlu1 %v2831_v33, %s2673_s15 }
0x166d   :  { %741 = vrot.lane.b32.xlu1 %v2915_v26, %s2673_s15 }
0x1671   :  { %1129 = vrot.lane.b32.xlu1 %v2999_v20, %s2673_s15  ;;  %v2541_v20 = vld [vmem:[%s3235_s1 + $0x38] sm:$0xff]  }
0x1672   :  { %2487 = vmatprep.subr.bf16.mxu1 %v2541_v20 }
0x1673   :  { %2488 = vmatpush3.bf16.msra.mxu1 %v2541_v20 }
0x1674   :  { %2489 = vmatprep.subr.bf16.mxu1 %v2542_v51 }
0x1675   :  { %1517 = vrot.lane.b32.xlu1 %v3099_v13, %s2673_s15 }
0x1677   :  { %2490 = vmatpush3.bf16.msra.mxu1 %v2542_v51 }
0x1678   :  { %2505 = vmatprep.subr.bf16.mxu1 %v2669_v3 }
0x16d7   :  { %v1698_v46 = vpop.permute.xlu1 %1697 }
0x16d8   :  { %v1700_v47 = vadd.f32 %v1698_v46, %v1631_v41  ;;  %v2549_v41 = vld [vmem:[%s3235_s1 + $0x40] sm:$0xff]   ;;  %s2679_s1 = smov 24  }
0x16da   :  { %2644 = vtanh.f32 %v1700_v47 }
0x16db   :  { %v353_v40 = vpop.permute.xlu1 %352 }
0x16dc   :  { %356 = vst.msk [vmem:[#allocation3] sm:$0xf] %vm355_vm5, %v353_v40 }
0x16df   :  { %v742_v48 = vpop.permute.xlu1 %741 }
0x16e0   :  { %744 = vst.msk [vmem:[#allocation3 + $0x8] sm:$0xf] %vm355_vm5, %v742_v48 }
0x16e3   :  { %v1130_v33 = vpop.permute.xlu1 %1129 }
0x16e4   :  { %1132 = vst.msk [vmem:[#allocation3 + $0x10] sm:$0xf] %vm355_vm5, %v1130_v33  ;;  %v2193_v33 = vld [vmem:[%s3237_s2 + $0x6] ss:$0 sm:$0xff] }
0x16e7   :  { %v2645_v26 = vpop.eup %2644  ;;  %v1518_v49 = vpop.permute.xlu1 %1517 }
0x16e8   :  { %1520 = vst.msk [vmem:[#allocation3 + $0x18] sm:$0xf] %vm355_vm5, %v1518_v49  ;;  %1704 = vrot.lane.b32.xlu0 %v2645_v26, %s2673_s15 }
0x16ec   :  { %547 = vrot.lane.b32.xlu0 %v2873_v29, %s2673_s15 }
0x16f0   :  { %935 = vrot.lane.b32.xlu0 %v2957_v24, %s2673_s15  ;;  %v1708_v24 = vmul.f32 %v2643_v50, %v3099_v13 }
0x16f4   :  { %1323 = vrot.lane.b32.xlu0 %v3051_v16, %s2673_s15 }
0x175a   :  { %v1705_v29 = vpop.permute.xlu0 %1704 }
0x175b   :  { %v1707_v53 = vmul.f32 %v1705_v29, %v1702_v52 }
0x175d   :  { %v1709_v16 = vadd.f32 %v1708_v24, %v1707_v53 }
0x175e   :  { %v548_v54 = vpop.permute.xlu0 %547 }
0x175f   :  { %550 = vst.msk [vmem:[#allocation3 + $0x4] sm:$0xf] %vm355_vm5, %v548_v54  ;;  %1711 = vrot.lane.b32.xlu0 %v1709_v16, %s2673_s15 }
0x1762   :  { %v936_v55 = vpop.permute.xlu0 %935 }
0x1763   :  { %938 = vst.msk [vmem:[#allocation3 + $0xc] sm:$0xf] %vm355_vm5, %v936_v55 }
0x1766   :  { %v1324_v57 = vpop.permute.xlu0 %1323  ;;  %v1715_v56 = vld [vmem:[#allocation3] sm:$0xff] }
0x1767   :  { %1326 = vst.msk [vmem:[#allocation3 + $0x14] sm:$0xf] %vm355_vm5, %v1324_v57 }
0x176a   :  { %v1716_v58 = vld [vmem:[#allocation3 + $0x8] sm:$0xff] }
0x176b   :  { %v1724_v59 = vpack.c.bf16 %v1716_v58, %v1715_v56 }
0x176d   :  { %2491 = vmatprep.mubr.msk.bf16.mxu1 %vm122_vm4, %v1724_v59 }
0x176e   :  { %v1717_v61 = vld [vmem:[#allocation3 + $0x10] sm:$0xff] }
0x17d1   :  { %v1712_v60 = vpop.permute.xlu0 %1711 }
0x17d2   :  { %1714 = vst.msk [vmem:[#allocation3 + $0x1c] sm:$0xf] %vm355_vm5, %v1712_v60 }
0x17d9   :  { %v1718_v21 = vld [vmem:[#allocation3 + $0x18] sm:$0xff] }
0x17da   :  { %v1725_v62 = vpack.c.bf16 %v1718_v21, %v1717_v61 }
0x17dc   :  { %2492 = vmatmul.mubr.msk.bf16.vlgmr.msra.gmra.mxu1 %vm122_vm4, %v1725_v62 }
0x17dd   :  { %2509 = vmatprep.mubr.msk.bf16.mxu1 %vm2670_vm2, %v2669_v3  ;;  %2506 = vmatpush3.bf16.msra.mxu1 %v2546_v35 }
0x17de   :  { %2507 = vmatprep.subr.bf16.mxu1 %v2669_v3 }
0x17e1   :  { %2508 = vmatpush3.bf16.msra.mxu1 %v2548_v39 }
0x189c   :  { %v2493_v4 = vpop.f32.mrf.mxu1 }
0x189d   :  { %v1791_v12 = vadd.f32 %v2493_v4, %v2175_v5 }
0x189e   :  { %v1782_v6 = vpop.f32.mrf.mxu1 }
0x189f   :  { %v1783_v7 = vadd.f32 %v2175_v5, %v1782_v6 }
0x18a0   :  { %v2494_v8 = vpop.f32.mrf.mxu1 }
0x18a1   :  { %v1794_v10 = vadd.f32 %v2494_v8, %v2175_v5  ;;  %2646 = vtanh.f32 %v1783_v7 }
0x18a2   :  { %v1785_v13 = vpop.f32.mrf.mxu1 }
0x18a3   :  { %v1786_v14 = vadd.f32 %v2175_v5, %v1785_v13  ;;  %2648 = vtanh.f32 %v1794_v10 }
0x18a5   :  { %2650 = vtanh.f32 %v1786_v14  ;;  %v2195_v14 = vld [vmem:[%s3237_s2 + $0x8] ss:$0 sm:$0xff] }
0x18a6   :  { %2652 = vtanh.f32 %v1791_v12  ;;  %v2194_v12 = vld [vmem:[%s3237_s2 + $0x7] ss:$0 sm:$0xff] }
0x18ae   :  { %v2647_v15 = vpop.eup %2646 }
0x18b0   :  { %v2649_v17 = vpop.eup %2648 }
0x18b2   :  { %v2651_v18 = vpop.eup %2650 }
0x18b3   :  { %v2653_v19 = vpop.eup %2652  ;;  %v1807_v22 = vpack.c.bf16 %v2651_v18, %v2647_v15  ;;  %v2196_v18 = vld [vmem:[%s3237_s2 + $0x9] ss:$0 sm:$0xff] }
0x18b4   :  { %v1808_v23 = vpack.c.bf16 %v2649_v17, %v2653_v19 }
0x18b5   :  { %2501 = vmatprep.mubr.msk.bf16.mxu0 %vm1828_vm7, %v1807_v22 }
0x18b6   :  { %2502 = vmatmul.mubr.msk.bf16.vlgmr.msra.gmra.mxu0 %vm1828_vm7, %v1808_v23 }
0x18b7   :  { %2517 = vmatprep.mubr.msk.bf16.mxu0 %vm2670_vm2, %v2669_v3  ;;  %2514 = vmatpush3.bf16.msra.mxu0 %v2547_v32 }
0x18b8   :  { %2515 = vmatprep.subr.bf16.mxu0 %v2669_v3 }
0x18bb   :  { %2516 = vmatpush3.bf16.msra.mxu0 %v2549_v41 }
0x1976   :  { %v2503_v28 = vpop.f32.mrf.mxu0 }
0x1977   :  { %v1882_v31 = vadd.f32 %v2503_v28, %v2180_v27 }
0x1978   :  { %v1873_v30 = vpop.f32.mrf.mxu0 }
0x1979   :  { %v1874_v37 = vadd.f32 %v2180_v27, %v1873_v30  ;;  %1913 = vrot.lane.b32.xlu1 %v1882_v31, %s2674_s25  ;;  %1908 = vrot.lane.b32.xlu0 %v1882_v31, %s2675_s26 }
0x197a   :  { %v2504_v25 = vpop.f32.mrf.mxu0 }
0x197b   :  { %1889 = vst.msk [vmem:[%s3238_s3] sm:$0xf] %vm1888_vm8, %v1874_v37  ;;  %v1885_v36 = vadd.f32 %v2504_v25, %v2180_v27 }
0x197c   :  { %v1876_v34 = vpop.f32.mrf.mxu0 }
0x197d   :  { %v1877_v9 = vadd.f32 %v2180_v27, %v1876_v34  ;;  %1891 = vrot.lane.b32.xlu1 %v1874_v37, %s2676_s7  ;;  %v2197_v27 = vld [vmem:[%s3237_s2 + $0xa] ss:$0 sm:$0xff] }
0x197f   :  { %1897 = vrot.lane.b32.xlu0 %v1877_v9, %s2677_s0 }
0x1981   :  { %1902 = vrot.lane.b32.xlu1 %v1877_v9, %s2678_s8 }
0x1983   :  { %1919 = vrot.lane.b32.xlu0 %v1885_v36, %s2679_s1 }
0x1985   :  { %1924 = vrot.lane.b32.xlu1 %v1885_v36, %s2680_s9 }
0x19eb   :  { %v1914_v42 = vpop.permute.xlu1 %1913  ;;  %v1909_v11 = vpop.permute.xlu0 %1908 }
0x19ef   :  { %v1892_v38 = vpop.permute.xlu1 %1891 }
0x19f0   :  { %1895 = vst.msk [vmem:[%s3238_s3 - $0x4] sm:$0xf0] %vm1894_vm9, %v1892_v38 }
0x19f1   :  { %v1898_v3 = vpop.permute.xlu0 %1897 }
0x19f2   :  { %1901 = vst.msk [vmem:[%s3238_s3] sm:$0xf] %vm1900_vm10, %v1898_v3 }
0x19f3   :  { %v1903_v43 = vpop.permute.xlu1 %1902 }
0x19f4   :  { %1906 = vst.msk [vmem:[%s3238_s3 - $0x4] sm:$0xf0] %vm1905_vm11, %v1903_v43 }
0x19f5   :  { %1912 = vst.msk [vmem:[%s3238_s3] sm:$0xf] %vm1911_vm12, %v1909_v11  ;;  %v1920_v50 = vpop.permute.xlu0 %1919 }
0x19f6   :  { %1917 = vst.msk [vmem:[%s3238_s3 - $0x4] sm:$0xf0] %vm1916_vm13, %v1914_v42 }
0x19f7   :  { %1923 = vst.msk [vmem:[%s3238_s3] sm:$0xf] %vm1922_vm14, %v1920_v50  ;;  %v1925_v44 = vpop.permute.xlu1 %1924 }
0x19f8   :  { %1928 = vst.msk [vmem:[%s3238_s3 - $0x4] sm:$0xf0] %vm1927_vm15, %v1925_v44 }
0x19ff   :  { %v2186_v45 = vld [vmem:[%s3238_s3 + $0x1] ss:$2 sm:$0x3]  ;;  %v1929_v46 = vld [vmem:[%s3238_s3] ss:$2 sm:$0x3] }
0x1a00   :  { %v1933_v47 = vpack.c.bf16 %v2186_v45, %v2186_v45  ;;  %v1930_v40 = vpack.c.bf16 %v1929_v46, %v1929_v46 }
0x1a02   :  { %2510 = vmatmul.mubr.msk.bf16.vlgmr.msra.gmra.mxu1 %vm122_vm4, %v1933_v47  ;;  %2518 = vmatmul.mubr.msk.bf16.vlgmr.msra.gmra.mxu0 %vm122_vm4, %v1930_v40 }
0x1ac2   :  { %v1992_v48 = vpop.f32.mrf.mxu1  ;;  %v2047_v26 = vpop.f32.mrf.mxu0 }
0x1ac3   :  { %v2048_v49 = vadd.f32 %v2047_v26, %v1992_v48 }
0x1ac4   :  { %v2511_v20 = vpop.f32.mrf.mxu1  ;;  %v2519_v51 = vpop.f32.mrf.mxu0 }
0x1ac5   :  { %v2057_v52 = vadd.f32 %v2193_v33, %v2048_v49 }
0x1ac6   :  { %v1995_v29 = vpop.f32.mrf.mxu1  ;;  %v2050_v24 = vpop.f32.mrf.mxu0 }
0x1ac7   :  { %v2059_v53 = vsel %vm2058_vm0, %v2057_v52, 0.0 }
0x1ac8   :  { %v2512_v16 = vpop.f32.mrf.mxu1  ;;  %v2520_v54 = vpop.f32.mrf.mxu0  ;;  %v2060_v55 = vrot.slane %v2059_v53, 4 }
0x1aca   :  { %v2061_v57 = vadd.f32 %v2060_v55, %v2059_v53 }
0x1acc   :  { %v2062_v56 = vrot.slane %v2061_v57, 2 }
0x1ace   :  { %v2063_v58 = vadd.f32 %v2062_v56, %v2061_v57 }
0x1ad0   :  { %v2064_v59 = vrot.slane %v2063_v58, 1 }
0x1ad2   :  { %v2065_v60 = vadd.f32 %v2064_v59, %v2063_v58 }
0x1ad4   :  { %v2067_v61 = vmul.f32 0.5, %v2065_v60 }
0x1ad6   :  { %v2068_v21 = vsub.f32 %v2057_v52, %v2067_v61 }
0x1ad8   :  { %v2069_v62 = vmul.f32 %v2068_v21, %v2068_v21 }
0x1ada   :  { %v2070_v63 = vsel %vm2058_vm0, %v2069_v62, 0.0 }
0x1adb   :  { %v2071_v0 = vrot.slane %v2070_v63, 4 }
0x1add   :  { %v2072_v1 = vadd.f32 %v2071_v0, %v2070_v63 }
0x1adf   :  { %v2073_v2 = vrot.slane %v2072_v1, 2 }
0x1ae1   :  { %v2074_v4 = vadd.f32 %v2073_v2, %v2072_v1 }
0x1ae3   :  { %v2075_v5 = vrot.slane %v2074_v4, 1 }
0x1ae5   :  { %v2076_v6 = vadd.f32 %v2075_v5, %v2074_v4 }
0x1ae7   :  { %v2077_v7 = vmul.f32 0.5, %v2076_v6 }
0x1ae9   :  { %v2080_v8 = vadd.f32 1e-05, %v2077_v7 }
0x1aeb   :  { %2654 = vrsqrt.f32 %v2080_v8 }
0x1af8   :  { %v2655_v10 = vpop.eup %2654 }
0x1af9   :  { %v2082_v13 = vmul.f32 %v2655_v10, %v2068_v21 }
0x1afb   :  { %v2087_v15 = vmul.f32 %v2194_v12, %v2082_v13 }
0x1afd   :  { %v2092_v17 = vadd.f32 %v2195_v14, %v2087_v15 }
0x1aff   :  { %2656 = vtanh.f32 %v2092_v17 }
0x1b0c   :  { %v2657_v19 = vpop.eup %2656 }
0x1b0d   :  { %v2100_v22 = vmul.f32 %v2657_v19, %v2196_v18 }
0x1b0f   :  { %v2101_v23 = vsel %vm2058_vm0, %v2100_v22, 0.0 }
0x1b10   :  { %2102 = vadd.xlane.f32.xlu0 %v2101_v23 }
0x1b99   :  { %v2103_v28 = vpop.xlane.xlu0 %2102 }
0x1b9a   :  { %v2108_v31 = vadd.f32 %v2197_v27, %v2103_v28 }
0x1b9c   :  { %v2198_v30 = vmul.f32 -1.442695, %v2108_v31 }
0x1b9e   :  { %2658 = vpow2.f32 %v2198_v30 }
0x1bab   :  { %v2659_v35 = vpop.eup %2658 }
0x1bac   :  { %v2112_v32 = vadd.f32 1.0, %v2659_v35 }
0x1bae   :  { %2660 = vrcp.f32 %v2112_v32 }
0x1bbb   :  { %v2661_v37 = vpop.eup %2660 }
0x1bbc   :  { %2116 = vst.msk [vmem:[%s3239_s4] sm:$0x3] %vm2115_vm1, %v2661_v37 }

</bundles_post_ra>
